<compile_context>
chip_gen: v6e
topology: v6e:2x2x1
jax: 0.10.0
libtpu: 0.0.40
codegen_flags: <defaults>
</compile_context>

<pallas_src>
import jax
import jax.numpy as jnp
from jax.experimental import pallas as pl
from jax.experimental.pallas import tpu as pltpu


# ----------------------------------------------------------------------------
# Kernel 1: TimeBlock1 + graph conv + Theta matmul + ReLU   (one step per batch)
# ----------------------------------------------------------------------------
def temporal_graph_kernel(x_ref, w_ref, b_ref, th_ref, ak_ref, o_ref):
    x = x_ref[0].astype(jnp.float32)                      # (N, T, Cin)
    N, T, Cin = x.shape
    K = w_ref.shape[0]
    T_out = T - K + 1
    Cout3 = w_ref.shape[2]
    Cout = Cout3 // 3
    Csp = th_ref.shape[1]

    # One matmul per temporal tap, packed over the three conv branches.
    acc = jnp.zeros((N * T_out, Cout3), jnp.float32)
    for k in range(K):                                    # static unroll (K=3)
        xk = x[:, k:k + T_out, :].reshape(N * T_out, Cin)
        acc = acc + jnp.dot(xk, w_ref[k], preferred_element_type=jnp.float32)
    y = acc + b_ref[...]                                  # (N*T_out, 3*Cout)

    c1 = y[:, :Cout]
    c2 = y[:, Cout:2 * Cout]
    c3 = y[:, 2 * Cout:]
    t = jnp.maximum(c1 + jax.nn.sigmoid(c2) + c3, 0.0)    # (N*T_out, Cout)

    # Theta contraction commutes with the node mixing; apply it first (narrower
    # operand), then mix nodes with a single 2-D matmul vs kron(A_hat, I_Tout).
    u = jnp.dot(t, th_ref[...], preferred_element_type=jnp.float32)    # (N*T_out, Csp)
    lfs = jnp.dot(ak_ref[...], u, preferred_element_type=jnp.float32)  # (N*T_out, Csp)
    t2 = jnp.maximum(lfs, 0.0)

    o_ref[:, 0] = t2.reshape(N, T_out, Csp).astype(o_ref.dtype)


# ----------------------------------------------------------------------------
# Kernel 2: TimeBlock2 + BatchNorm2d(num_nodes)             (one step per node)
# ----------------------------------------------------------------------------
def temporal_bn_kernel(t2_ref, w_ref, b_ref, gamma_ref, beta_ref, o_ref):
    n = pl.program_id(0)
    x = t2_ref[0].astype(jnp.float32)                     # (B, T1, Csp)
    B, T1, Csp = x.shape
    K = w_ref.shape[0]
    T2 = T1 - K + 1
    Cout3 = w_ref.shape[2]
    Cout = Cout3 // 3

    acc = jnp.zeros((B * T2, Cout3), jnp.float32)
    for k in range(K):                                    # static unroll (K=3)
        xk = x[:, k:k + T2, :].reshape(B * T2, Csp)
        acc = acc + jnp.dot(xk, w_ref[k], preferred_element_type=jnp.float32)
    y = acc + b_ref[...]                                  # (B*T2, 3*Cout)

    c1 = y[:, :Cout]
    c2 = y[:, Cout:2 * Cout]
    c3 = y[:, 2 * Cout:]
    t3 = jnp.maximum(c1 + jax.nn.sigmoid(c2) + c3, 0.0)   # (B*T2, Cout)

    # BatchNorm2d(num_nodes), training-mode statistics: this node's slab covers
    # the full (batch, time, feature) reduction domain.
    mean = jnp.mean(t3)
    cen = t3 - mean
    var = jnp.mean(cen * cen)
    inv = jax.lax.rsqrt(var + 1e-5)
    out = cen * (inv * gamma_ref[n]) + beta_ref[n]

    o_ref[:, 0] = out.reshape(B, T2, Cout).astype(o_ref.dtype)


# ----------------------------------------------------------------------------
# Wrapper
# ----------------------------------------------------------------------------
def _pack_time_block(w1, b1, w2, b2, w3, b3):
    """Pack the three conv branches: (K, Cin, 3*Cout) weight, (1, 3*Cout) bias."""
    w = jnp.concatenate([w1, w2, w3], axis=-1)
    b = jnp.concatenate([b1, b2, b3], axis=-1)
    return w, b


def stgcn_block_forward(x, a_hat, params):
    B, N, T, Cin = x.shape
    w1p, b1p = _pack_time_block(*params["t1"])
    w2p, b2p = _pack_time_block(*params["t2"])
    theta = params["theta"].astype(jnp.float32)

    K1 = w1p.shape[0]
    T1 = T - K1 + 1
    Cout = w1p.shape[2] // 3
    Csp = theta.shape[1]
    K2 = w2p.shape[0]
    T2 = T1 - K2 + 1
    Cout2 = w2p.shape[2] // 3

    # Node mixing expressed as one 2-D matmul: kron(A_hat, I_{T1}) (N*T1, N*T1).
    a_kron = jnp.kron(a_hat.astype(jnp.float32), jnp.eye(T1, dtype=jnp.float32))

    # --- Kernel 1: TimeBlock1 + graph conv + Theta + ReLU, grid over batch ---
    t2 = pl.pallas_call(
        temporal_graph_kernel,
        grid=(B,),
        in_specs=[
            pl.BlockSpec((1, N, T, Cin), lambda b: (b, 0, 0, 0)),
            pl.BlockSpec((K1, Cin, 3 * Cout), lambda b: (0, 0, 0)),
            pl.BlockSpec((1, 3 * Cout), lambda b: (0, 0)),
            pl.BlockSpec((Cout, Csp), lambda b: (0, 0)),
            pl.BlockSpec((N * T1, N * T1), lambda b: (0, 0)),
        ],
        # Node-major intermediate so kernel 2 gets per-node blocks directly.
        out_specs=pl.BlockSpec((N, 1, T1, Csp), lambda b: (0, b, 0, 0)),
        out_shape=jax.ShapeDtypeStruct((N, B, T1, Csp), jnp.float32),
        compiler_params=pltpu.CompilerParams(dimension_semantics=("parallel",)),
    )(x, w1p, b1p, theta, a_kron)

    # --- Kernel 2: TimeBlock2 + BatchNorm2d(num_nodes), grid over nodes ---
    out = pl.pallas_call(
        temporal_bn_kernel,
        grid=(N,),
        in_specs=[
            pl.BlockSpec((1, B, T1, Csp), lambda n: (n, 0, 0, 0)),
            pl.BlockSpec((K2, Csp, 3 * Cout2), lambda n: (0, 0, 0)),
            pl.BlockSpec((1, 3 * Cout2), lambda n: (0, 0)),
            pl.BlockSpec(memory_space=pltpu.MemorySpace.SMEM),
            pl.BlockSpec(memory_space=pltpu.MemorySpace.SMEM),
        ],
        out_specs=pl.BlockSpec((B, 1, T2, Cout2), lambda n: (0, n, 0, 0)),
        out_shape=jax.ShapeDtypeStruct((B, N, T2, Cout2), jnp.float32),
        compiler_params=pltpu.CompilerParams(dimension_semantics=("parallel",)),
    )(t2, w2p, b2p, params["gamma"], params["beta"])
    return out


# ----------------------------------------------------------------------------
# Pure-JAX reference (correctness check)
# ----------------------------------------------------------------------------
def _time_block_ref(x, w1, b1, w2, b2, w3, b3):
    K = w1.shape[0]
    T_out = x.shape[2] - K + 1

    def conv(w, b):
        acc = jnp.zeros(x.shape[:2] + (T_out, w.shape[2]), jnp.float32)
        for k in range(K):
            acc = acc + jnp.einsum("bntc,cd->bntd", x[:, :, k:k + T_out, :], w[k])
        return acc + b.reshape(1, 1, 1, -1)

    c1, c2, c3 = conv(w1, b1), conv(w2, b2), conv(w3, b3)
    return jax.nn.relu(c1 + jax.nn.sigmoid(c2) + c3)


def _stgcn_ref(x, a_hat, params):
    t = _time_block_ref(x, *params["t1"])
    lfs = jnp.einsum("ij,bjtc->bitc", a_hat, t)
    t2 = jax.nn.relu(jnp.einsum("bntc,cs->bnts", lfs, params["theta"]))
    t3 = _time_block_ref(t2, *params["t2"])
    mean = t3.mean(axis=(0, 2, 3), keepdims=True)
    var = ((t3 - mean) ** 2).mean(axis=(0, 2, 3), keepdims=True)
    g = params["gamma"].reshape(1, -1, 1, 1)
    b = params["beta"].reshape(1, -1, 1, 1)
    return (t3 - mean) / jnp.sqrt(var + 1e-5) * g + b


# ----------------------------------------------------------------------------
# Deterministic parameter construction (shapes from the PyTorch __init__)
# ----------------------------------------------------------------------------
def make_params(key, in_channels, spatial_channels, out_channels, num_nodes, K=3):
    keys = jax.random.split(key, 13)

    def conv_params(kw, kb, cin):
        w = 0.1 * jax.random.normal(kw, (K, cin, out_channels), jnp.float32)
        b = 0.1 * jax.random.normal(kb, (1, out_channels), jnp.float32)
        return w, b

    w11, b11 = conv_params(keys[0], keys[1], in_channels)
    w12, b12 = conv_params(keys[2], keys[3], in_channels)
    w13, b13 = conv_params(keys[4], keys[5], in_channels)
    w21, b21 = conv_params(keys[6], keys[7], spatial_channels)
    w22, b22 = conv_params(keys[8], keys[9], spatial_channels)
    w23, b23 = conv_params(keys[10], keys[11], spatial_channels)

    stdv = 1.0 / (spatial_channels ** 0.5)
    theta = jax.random.uniform(keys[12], (out_channels, spatial_channels),
                               jnp.float32, minval=-stdv, maxval=stdv)
    return {
        "t1": (w11, b11, w12, b12, w13, b13),
        "t2": (w21, b21, w22, b22, w23, b23),
        "theta": theta,
        "gamma": jnp.ones((num_nodes,), jnp.float32),
        "beta": jnp.zeros((num_nodes,), jnp.float32),
    }


if __name__ == "__main__":
    B, N, T = 2, 16, 12
    in_channels, spatial_channels, out_channels = 4, 8, 16

    key = jax.random.PRNGKey(0)
    k_x, k_a, k_p = jax.random.split(key, 3)

    x = jax.random.normal(k_x, (B, N, T, in_channels), jnp.float32)
    a_raw = jnp.abs(jax.random.normal(k_a, (N, N), jnp.float32)) + jnp.eye(N)
    a_hat = a_raw / a_raw.sum(axis=1, keepdims=True)   # normalized adjacency

    params = make_params(k_p, in_channels, spatial_channels, out_channels, N)

    out = jax.block_until_ready(stgcn_block_forward(x, a_hat, params))
    ref = jax.block_until_ready(_stgcn_ref(x, a_hat, params))

    assert out.shape == (B, N, T - 4, out_channels), out.shape
    max_err = float(jnp.max(jnp.abs(out - ref)))
    assert jnp.allclose(out, ref, rtol=2e-3, atol=2e-3), max_err

    print("KERNEL_OK")
</pallas_src>

<mosaic_0001>
module attributes {stable_mosaic.version = 11 : i64} {
  func.func @temporal_graph_kernel(%arg0: i32, %arg1: memref<1x16x12x4xf32, #tpu.memory_space<vmem>>, %arg2: memref<3x4x48xf32, #tpu.memory_space<vmem>>, %arg3: memref<1x48xf32, #tpu.memory_space<vmem>>, %arg4: memref<16x8xf32, #tpu.memory_space<vmem>>, %arg5: memref<160x160xf32, #tpu.memory_space<vmem>>, %arg6: memref<16x1x10x8xf32, #tpu.memory_space<vmem>>) attributes {dimension_semantics = [#tpu.dimension_semantics<parallel>], iteration_bounds = array<i64: 2>, scalar_prefetch = 0 : i64, scratch_operands = 0 : i64, tpu.core_type = #tpu.core_type<tc>, window_params = [{transform_indices = @transform_0, window_bounds = array<i64: 1, 16, 12, 4>}, {pipeline_mode = #tpu.pipeline_mode<synchronous>, transform_indices = @transform_1, window_bounds = array<i64: 3, 4, 48>}, {pipeline_mode = #tpu.pipeline_mode<synchronous>, transform_indices = @transform_2, window_bounds = array<i64: 1, 48>}, {pipeline_mode = #tpu.pipeline_mode<synchronous>, transform_indices = @transform_3, window_bounds = array<i64: 16, 8>}, {pipeline_mode = #tpu.pipeline_mode<synchronous>, transform_indices = @transform_4, window_bounds = array<i64: 160, 160>}, {transform_indices = @transform_5, window_bounds = array<i64: 16, 1, 10, 8>}]} {
    %c0 = arith.constant 0 : index
    %c0_0 = arith.constant 0 : index
    %c0_1 = arith.constant 0 : index
    %c0_2 = arith.constant 0 : index
    %0 = vector.load %arg1[%c0, %c0_0, %c0_1, %c0_2] : memref<1x16x12x4xf32, #tpu.memory_space<vmem>>, vector<1x16x12x4xf32>
    %1 = vector.shape_cast %0 : vector<1x16x12x4xf32> to vector<16x12x4xf32>
    %cst = arith.constant 0.000000e+00 : f32
    %2 = vector.broadcast %cst : f32 to vector<160x48xf32>
    %3 = vector.extract_strided_slice %1 {offsets = [0, 0, 0], sizes = [16, 10, 4], strides = [1, 1, 1]} : vector<16x12x4xf32> to vector<16x10x4xf32>
    %4 = vector.shape_cast %3 : vector<16x10x4xf32> to vector<160x4xf32>
    %c0_3 = arith.constant 0 : index
    %c0_4 = arith.constant 0 : index
    %c0_5 = arith.constant 0 : index
    %5 = vector.load %arg2[%c0_3, %c0_4, %c0_5] : memref<3x4x48xf32, #tpu.memory_space<vmem>>, vector<1x4x48xf32>
    %6 = vector.shape_cast %5 : vector<1x4x48xf32> to vector<4x48xf32>
    %cst_6 = arith.constant dense<0.000000e+00> : vector<160x48xf32>
    %7 = tpu.matmul %4, %6, %cst_6 {dimension_numbers = #tpu.dot_dimension_numbers<[1], [0], [0], [1], [0, 0, 1, 1], [], []>} : vector<160x4xf32>, vector<4x48xf32>, vector<160x48xf32> -> vector<160x48xf32>
    %8 = arith.addf %2, %7 : vector<160x48xf32>
    %9 = vector.extract_strided_slice %1 {offsets = [0, 1, 0], sizes = [16, 10, 4], strides = [1, 1, 1]} : vector<16x12x4xf32> to vector<16x10x4xf32>
    %10 = vector.shape_cast %9 : vector<16x10x4xf32> to vector<160x4xf32>
    %c1 = arith.constant 1 : index
    %c0_7 = arith.constant 0 : index
    %c0_8 = arith.constant 0 : index
    %11 = vector.load %arg2[%c1, %c0_7, %c0_8] : memref<3x4x48xf32, #tpu.memory_space<vmem>>, vector<1x4x48xf32>
    %12 = vector.shape_cast %11 : vector<1x4x48xf32> to vector<4x48xf32>
    %cst_9 = arith.constant dense<0.000000e+00> : vector<160x48xf32>
    %13 = tpu.matmul %10, %12, %cst_9 {dimension_numbers = #tpu.dot_dimension_numbers<[1], [0], [0], [1], [0, 0, 1, 1], [], []>} : vector<160x4xf32>, vector<4x48xf32>, vector<160x48xf32> -> vector<160x48xf32>
    %14 = arith.addf %8, %13 : vector<160x48xf32>
    %15 = vector.extract_strided_slice %1 {offsets = [0, 2, 0], sizes = [16, 10, 4], strides = [1, 1, 1]} : vector<16x12x4xf32> to vector<16x10x4xf32>
    %16 = vector.shape_cast %15 : vector<16x10x4xf32> to vector<160x4xf32>
    %c2 = arith.constant 2 : index
    %c0_10 = arith.constant 0 : index
    %c0_11 = arith.constant 0 : index
    %17 = vector.load %arg2[%c2, %c0_10, %c0_11] : memref<3x4x48xf32, #tpu.memory_space<vmem>>, vector<1x4x48xf32>
    %18 = vector.shape_cast %17 : vector<1x4x48xf32> to vector<4x48xf32>
    %cst_12 = arith.constant dense<0.000000e+00> : vector<160x48xf32>
    %19 = tpu.matmul %16, %18, %cst_12 {dimension_numbers = #tpu.dot_dimension_numbers<[1], [0], [0], [1], [0, 0, 1, 1], [], []>} : vector<160x4xf32>, vector<4x48xf32>, vector<160x48xf32> -> vector<160x48xf32>
    %20 = arith.addf %14, %19 : vector<160x48xf32>
    %c0_13 = arith.constant 0 : index
    %c0_14 = arith.constant 0 : index
    %21 = vector.load %arg3[%c0_13, %c0_14] : memref<1x48xf32, #tpu.memory_space<vmem>>, vector<1x48xf32>
    %22 = vector.broadcast %21 : vector<1x48xf32> to vector<160x48xf32>
    %23 = arith.addf %20, %22 : vector<160x48xf32>
    %24 = vector.extract_strided_slice %23 {offsets = [0, 0], sizes = [160, 16], strides = [1, 1]} : vector<160x48xf32> to vector<160x16xf32>
    %25 = vector.extract_strided_slice %23 {offsets = [0, 16], sizes = [160, 16], strides = [1, 1]} : vector<160x48xf32> to vector<160x16xf32>
    %26 = vector.extract_strided_slice %23 {offsets = [0, 32], sizes = [160, 16], strides = [1, 1]} : vector<160x48xf32> to vector<160x16xf32>
    %27 = arith.negf %25 : vector<160x16xf32>
    %28 = math.exp %27 : vector<160x16xf32>
    %cst_15 = arith.constant 1.000000e+00 : f32
    %29 = vector.broadcast %cst_15 : f32 to vector<160x16xf32>
    %30 = arith.addf %29, %28 : vector<160x16xf32>
    %31 = arith.divf %29, %30 : vector<160x16xf32>
    %32 = arith.addf %24, %31 : vector<160x16xf32>
    %33 = arith.addf %32, %26 : vector<160x16xf32>
    %cst_16 = arith.constant 0.000000e+00 : f32
    %34 = vector.broadcast %cst_16 : f32 to vector<160x16xf32>
    %35 = arith.maximumf %33, %34 : vector<160x16xf32>
    %c0_17 = arith.constant 0 : index
    %c0_18 = arith.constant 0 : index
    %36 = vector.load %arg4[%c0_17, %c0_18] : memref<16x8xf32, #tpu.memory_space<vmem>>, vector<16x8xf32>
    %cst_19 = arith.constant dense<0.000000e+00> : vector<160x8xf32>
    %37 = tpu.matmul %35, %36, %cst_19 {dimension_numbers = #tpu.dot_dimension_numbers<[1], [0], [0], [1], [0, 0, 1, 1], [], []>} : vector<160x16xf32>, vector<16x8xf32>, vector<160x8xf32> -> vector<160x8xf32>
    %c0_20 = arith.constant 0 : index
    %c0_21 = arith.constant 0 : index
    %38 = vector.load %arg5[%c0_20, %c0_21] : memref<160x160xf32, #tpu.memory_space<vmem>>, vector<160x160xf32>
    %cst_22 = arith.constant dense<0.000000e+00> : vector<160x8xf32>
    %39 = tpu.matmul %38, %37, %cst_22 {dimension_numbers = #tpu.dot_dimension_numbers<[1], [0], [0], [1], [0, 0, 1, 1], [], []>} : vector<160x160xf32>, vector<160x8xf32>, vector<160x8xf32> -> vector<160x8xf32>
    %cst_23 = arith.constant 0.000000e+00 : f32
    %40 = vector.broadcast %cst_23 : f32 to vector<160x8xf32>
    %41 = arith.maximumf %39, %40 : vector<160x8xf32>
    %42 = vector.shape_cast %41 : vector<160x8xf32> to vector<16x10x8xf32>
    %c0_24 = arith.constant 0 : index
    %c0_25 = arith.constant 0 : index
    %c0_26 = arith.constant 0 : index
    %c0_27 = arith.constant 0 : index
    %43 = vector.load %arg6[%c0_24, %c0_25, %c0_26, %c0_27] : memref<16x1x10x8xf32, #tpu.memory_space<vmem>>, vector<16x1x10x8xf32>
    %44 = vector.shape_cast %43 : vector<16x1x10x8xf32> to vector<16x10x8xf32>
    %45 = vector.shape_cast %42 : vector<16x10x8xf32> to vector<16x1x10x8xf32>
    tpu.vector_store %arg6[%c0_24, %c0_25, %c0_26, %c0_27], %45 {strides = array<i32>} : memref<16x1x10x8xf32, #tpu.memory_space<vmem>>, vector<16x1x10x8xf32>,
    return
  }
  func.func @transform_0(%arg0: i32) -> (i32, i32, i32, i32) {
    %c0_i32 = arith.constant 0 : i32
    %c0_i32_0 = arith.constant 0 : i32
    %c0_i32_1 = arith.constant 0 : i32
    %c0_i32_2 = arith.constant 0 : i32
    return %arg0, %c0_i32, %c0_i32_0, %c0_i32_1 : i32, i32, i32, i32
  }
  func.func @transform_1(%arg0: i32) -> (i32, i32, i32) {
    %c0_i32 = arith.constant 0 : i32
    %c0_i32_0 = arith.constant 0 : i32
    %c0_i32_1 = arith.constant 0 : i32
    %c0_i32_2 = arith.constant 0 : i32
    return %c0_i32, %c0_i32_0, %c0_i32_1 : i32, i32, i32
  }
  func.func @transform_2(%arg0: i32) -> (i32, i32) {
    %c0_i32 = arith.constant 0 : i32
    %c0_i32_0 = arith.constant 0 : i32
    %c0_i32_1 = arith.constant 0 : i32
    return %c0_i32, %c0_i32_0 : i32, i32
  }
  func.func @transform_3(%arg0: i32) -> (i32, i32) {
    %c0_i32 = arith.constant 0 : i32
    %c0_i32_0 = arith.constant 0 : i32
    %c0_i32_1 = arith.constant 0 : i32
    return %c0_i32, %c0_i32_0 : i32, i32
  }
  func.func @transform_4(%arg0: i32) -> (i32, i32) {
    %c0_i32 = arith.constant 0 : i32
    %c0_i32_0 = arith.constant 0 : i32
    %c0_i32_1 = arith.constant 0 : i32
    return %c0_i32, %c0_i32_0 : i32, i32
  }
  func.func @transform_5(%arg0: i32) -> (i32, i32, i32, i32) {
    %c0_i32 = arith.constant 0 : i32
    %c0_i32_0 = arith.constant 0 : i32
    %c0_i32_1 = arith.constant 0 : i32
    %c0_i32_2 = arith.constant 0 : i32
    return %c0_i32, %arg0, %c0_i32_0, %c0_i32_1 : i32, i32, i32, i32
  }
}

</mosaic_0001>

<bundles_post_ra>
// kernel: tpu_custom_call.1
= control target key start
LH: loop header
LB: loop body
LE: loop exit
PB: predicated region body
PF: predicated region fallthrough
CT: control target
= control target key end

     0   :  { %s5103_s18 = smov 0   ;;  %s5105_s19 = smov 0   ;;  %s6711_s0 = inlined_call_operand.vmem [shape: f32[2,16,12,4], index: 0, kind: input, shape index: {}]   ;;  %s6712_s1 = inlined_call_operand.vmem [shape: f32[3,4,48], index: 1, kind: input, shape index: {}]   ;;  %s6713_s2 = inlined_call_operand.vmem [shape: f32[1,48], index: 2, kind: input, shape index: {}]   ;;  %s6714_s3 = inlined_call_operand.vmem [shape: f32[16,8], index: 3, kind: input, shape index: {}]   ;;  %s6715_s4 = inlined_call_operand.vmem [shape: f32[160,160], index: 4, kind: input, shape index: {}]   ;;  %s6716_s5 = inlined_call_operand.vmem [shape: f32[16,2,10,8], index: 5, kind: output, shape index: {}]  }
   0x1   :  { %s5107_s20 = smov 0  }
   0x2 LB: > { %s5116_s21 = sadd.s32 4294967295, %s5067_s20   ;;  %s5118_s22 = sadd.s32 1, %s5067_s20   ;;  %s5067_s20 = sphi %s5107_s20, %s6893_s20   ;;  %s5063_s19 = sphi %s5105_s19, %s6892_s19   ;;  %s5059_s18 = sphi %s5103_s18, %s6891_s18  }
   0x3   : > { %s129_s23 = ssub.s32 %s5067_s20, %s5118_s22  ;;  %s132_s24 = sadd.s32 1, %s5063_s19 }
   0x4   : > { %p130_p0 = scmp.eq.s32.totalorder %s129_s23, 0  ;;  %p142_p1 = scmp.ne.s32.totalorder %s5063_s19, %s5059_s18 }
   0x5   : > { %p143_p2 = scmp.eq.s32.totalorder %s5116_s21, 1  ;;  %p4529_p3 = scmp.ge.s32.totalorder %s5067_s20, 1 }
   0x6   : > { %s5126_s25 = scalar_select %p130_p0, %s5063_s19, %s132_s24  }
   0x7   : > { %p5128_p4 = por %p143_p2, %p142_p1  ;;  %p187_p5 = scmp.lt.s32.totalorder %s5067_s20, 3 }
   0x9   : > { %p188_p6 = pnand %p4529_p3, %p187_p5 }
   0xb   : > { %191 = sbr.rel (%p188_p6) target bundleno = 1058 (0x422), region = 40 }
  0x10   : > { %v4565_v0 = vld [vmem:[%s6712_s1 + $0x4] sm:$0xf]  ;;  %vm1330_vm0 = vcmask 1043456   ;;  %p214_p7 = scmp.lt.s32.totalorder %s5116_s21, 1  ;;  %v287_v1 = vlaneseq  ;;  %v5069_v2 = vmov 1983009808  }
  0x11   : > { %4791 = vmatprep.subr.msk.mxu1 %vm1330_vm0, %v4565_v0  ;;  %v285_v3 = vunpack.c.l.s4 %v5069_v2  ;;  %vm684_vm1 = vcmask 1040384   ;;  %vm685_vm2 = vcmask 1042434   ;;  %v5140_v4 = vld [vmem:[%s6712_s1] sm:$0xf]  ;;  %vm687_vm4 = vcmask 1044484   ;;  %s5070_s17 = smov 96  }
  0x12   : > { %4792 = vmatpush3.msk.msra.mxu1 %vm1330_vm0, %v4565_v0  ;;  %s215_s6 = scalar_select %p214_p7, %s5116_s21, 1  ;;  %v288_v5 = vshrl.u32 %v287_v1, 7  ;;  %vm686_vm3 = vmor %vm684_vm1, %vm685_vm2  ;;  %v4608_v6 = vld [vmem:[%s6712_s1 + $0x8] sm:$0xf]  ;;  %vm689_vm6 = vcmask 1046534   ;;  %vm1289_vm8 = vcmask 31744  }
  0x13   : > { %v286_v7 = vunpack.c.0.s8 %v285_v3  ;;  %4823 = vmatprep.subr.msk.mxu1 %vm1330_vm0, %v5140_v4  ;;  %4855 = vmatprep.subr.msk.mxu0 %vm1330_vm0, %v4608_v6  ;;  %vm5158_vm5 = vmor %vm686_vm3, %vm687_vm4  ;;  %s5071_s24 = smov 112   ;;  %vm2986_vm9 = vcmask 130048   ;;  %vm3252_vm10 = vcmask 261120   ;;  %vm4276_vm11 = vcmask 58368   ;;  %s4705_s8 = sshll.u32 (%p5128_p4), %s5116_s21, 4 }
  0x14   : > { %s4704_s9 = sshll.u32 %s215_s6, 8  ;;  %4856 = vmatpush3.msk.msra.mxu0 %vm1330_vm0, %v4608_v6  ;;  %vm5190_vm7 = vmor %vm5158_vm5, %vm689_vm6  ;;  %s211_s6 = sand.u32 1, %s5059_s18   ;;  %vm4274_vm12 = vcmask 64512  }
  0x15   : > { %s5154_s12 = scalar_lea.vmem %s6711_s0, %s4704_s9  ;;  %v5156_v8 = vsub.s32 %v286_v7, %v288_v5  ;;  %s4530_s7 = sshll.u32 %s211_s6, 8 }
  0x16   : > { %v219_v10 = vld [vmem:[%s5154_s12] sm:$0xff]  ;;  %v5164_v11 = vld.sshfl [vmem:[%s5154_s12 + $0x8] sm:$0x33 pattern:$0x76325410]  ;;  %v221_v12 = vld [vmem:[%s5154_s12 + $0x10] sm:$0xff]  ;;  %s6638_s11 = scalar_lea.vmem (%p5128_p4), %s6716_s5, %s4705_s8 }
  0x17   : > { %v283_v13 = vcombine.high %v219_v10, %v219_v10  ;;  %v5168_v14 = vrot.slane %v219_v10, %v5156_v8  ;;  %v702_v15 = vrot.slane %v5164_v11, 7  ;;  %v307_v16 = vcombine.high %v221_v12, %v221_v12  ;;  %v223_v17 = vld [vmem:[%s5154_s12 + $0x20] sm:$0xff]  ;;  %v5231_v51 = vld.sshfl [vmem:[%s5154_s12 + $0x18] sm:$0x33 pattern:$0x76325410] }
  0x18   : > { %v5173_v18 = vrot.slane %v221_v12, %v5156_v8  ;;  %v668_v19 = vcombine.high %v5164_v11, %v5164_v11  ;;  %v331_v20 = vcombine.high %v223_v17, %v223_v17  ;;  %v5178_v21 = vrot.slane %v223_v17, %v5156_v8  ;;  %v5252_v0 = vld.sshfl [vmem:[%s5154_s12 + $0x28] sm:$0x33 pattern:$0x76325410]  ;;  %v225_v6 = vld [vmem:[%s5154_s12 + $0x30] sm:$0xff]  ;;  %s6482_s18 = scalar_lea.vmem [#allocation2], %s4530_s7 }
  0x19   : > { %v5181_v22 = vrot.slane %v283_v13, %v5156_v8  ;;  %v5185_v23 = vcombine.high %v5168_v14, %v5168_v14  ;;  %v4549_v25 = vrot.slane %v5168_v14, 9  ;;  %v704_v26 = vrot.slane %v702_v15, 2 }
  0x1a   : > { %v5196_v27 = vrot.slane %v307_v16, %v5156_v8  ;;  %v5200_v28 = vcombine.high %v5173_v18, %v5173_v18  ;;  %v705_v29 = vrot.slane %v668_v19, 7  ;;  %v4550_v30 = vrot.slane %v5173_v18, 9 }
  0x1b   : > { %v5205_v31 = vcombine.high %v5181_v22, %v5181_v22  ;;  %v693_v32 = vrot.slane %v5185_v23, 7  ;;  %v696_v33 = vrot.slane %v5181_v22, 7  ;;  %v5210_v34 = vrot.slane %v331_v20, %v5156_v8 }
  0x1c   : > { %v5214_v35 = vcombine.high %v5196_v27, %v5196_v27  ;;  %v706_v36 = vsel %vm5190_vm7, %v704_v26, %v705_v29  ;;  %v709_v37 = vrot.slane %v5200_v28, 7  ;;  %v712_v38 = vrot.slane %v5196_v27, 7 }
  0x1d   : > { %v694_v39 = vsel %vm5190_vm7, %v4549_v25, %v693_v32  ;;  %v695_v40 = vrot.slane %v693_v32, 2  ;;  %v698_v41 = vrot.slane %v696_v33, 2  ;;  %v699_v42 = vrot.slane %v5205_v31, 7 }
  0x1e   : > { %v710_v43 = vsel %vm5190_vm7, %v4550_v30, %v709_v37  ;;  %v711_v44 = vrot.slane %v709_v37, 2  ;;  %v714_v45 = vrot.slane %v712_v38, 2  ;;  %v715_v46 = vrot.slane %v5214_v35, 7 }
  0x1f   : > { %v697_v47 = vsel %vm5190_vm7, %v695_v40, %v696_v33  ;;  %v700_v48 = vsel %vm5190_vm7, %v698_v41, %v699_v42  ;;  %v701_v49 = vrot.slane %v699_v42, 2  ;;  %v966_v50 = vcombine.low %v706_v36, %v710_v43  ;;  %v5287_v40 = vld.sshfl [vmem:[%s5154_s12 + $0x38] sm:$0x33 pattern:$0x76325410] }
  0x20   : > { %v949_v52 = vcombine.low %v694_v39, %v697_v47  ;;  %v713_v53 = vsel %vm5190_vm7, %v711_v44, %v712_v38  ;;  %v716_v54 = vsel %vm5190_vm7, %v714_v45, %v715_v46  ;;  %v5244_v59 = vcombine.high %v5178_v21, %v5178_v21 }
  0x21   : > { %v703_v56 = vsel %vm5190_vm7, %v701_v49, %v702_v15  ;;  %v967_v57 = vcombine.low %v713_v53, %v716_v54  ;;  %v974_v58 = vrot.slane %v966_v50, %v5156_v8  ;;  %v5249_v62 = vcombine.high %v5231_v51, %v5231_v51 }
  0x22   : > { %v950_v60 = vcombine.low %v700_v48, %v703_v56  ;;  %v957_v61 = vrot.slane %v949_v52, %v5156_v8  ;;  %v717_v63 = vrot.slane %v715_v46, 2  ;;  %v718_v2 = vrot.slane %v5231_v51, 7 }
  0x23   : > { %v981_v1 = vrot.slane %v967_v57, %v5156_v8  ;;  %v4551_v3 = vrot.slane %v5178_v21, 9  ;;  %v725_v5 = vrot.slane %v5244_v59, 7  ;;  %v721_v9 = vrot.slane %v5249_v62, 7 }
  0x24   : > { %v964_v7 = vrot.slane %v950_v60, %v5156_v8  ;;  %v728_v10 = vrot.slane %v5210_v34, 7  ;;  %v5264_v12 = vcombine.high %v5210_v34, %v5210_v34  ;;  %v719_v15 = vsel %vm5190_vm7, %v717_v63, %v718_v2  ;;  %v5313_v60 = vld.sshfl [vmem:[%s5154_s12 + $0x48] sm:$0x33 pattern:$0x76325410] }
  0x25   : > { %v982_v13 = vcombine.low %v974_v58, %v981_v1  ;;  %v720_v16 = vrot.slane %v718_v2, 2  ;;  %v726_v17 = vsel %vm5190_vm7, %v4551_v3, %v725_v5  ;;  %v727_v20 = vrot.slane %v725_v5, 2 }
  0x26   : > { %v965_v19 = vcombine.low %v957_v61, %v964_v7  ;;  %v5271_v25 = vrot.slane %v225_v6, %v5156_v8  ;;  %v670_v26 = vcombine.high %v5252_v0, %v5252_v0  ;;  %v730_v30 = vrot.slane %v728_v10, 2 }
  0x27   : > { %v722_v29 = vsel %vm5190_vm7, %v720_v16, %v721_v9  ;;  %v731_v32 = vrot.slane %v5264_v12, 7  ;;  %v734_v33 = vrot.slane %v5252_v0, 7  ;;  %v729_v36 = vsel %vm5190_vm7, %v727_v20, %v728_v10 }
  0x28   : > { %4793 = vmatprep.mubr.msk.f32.mxu1 %vm1289_vm8, %v965_v19  ;;  %v983_v37 = vcombine.low %v719_v15, %v722_v29  ;;  %v5284_v38 = vcombine.high %v5271_v25, %v5271_v25  ;;  %v737_v39 = vrot.slane %v670_v26, 7  ;;  %v984_v41 = vcombine.low %v726_v17, %v729_v36  ;;  %v229_v26 = vld [vmem:[%s5154_s12 + $0x50] sm:$0xff] }
  0x29   : > { %4794 = vmatmul.mubr.msk.f32.vlgmr.msra.gmra.mxu1 %vm1289_vm8, %v982_v13  ;;  %v732_v42 = vsel %vm5190_vm7, %v730_v30, %v731_v32  ;;  %v733_v43 = vrot.slane %v731_v32, 2  ;;  %v736_v44 = vrot.slane %v734_v33, 2  ;;  %v4552_v46 = vrot.slane %v5271_v25, 9 }
  0x2a   : > { %4824 = vmatpush3.msk.msra.mxu1 %vm1330_vm0, %v5140_v4  ;;  %v991_v45 = vrot.slane %v983_v37, %v5156_v8  ;;  %v741_v47 = vrot.slane %v5284_v38, 7  ;;  %v355_v48 = vcombine.high %v225_v6, %v225_v6  ;;  %v998_v49 = vrot.slane %v984_v41, %v5156_v8  ;;  %v227_v4 = vld [vmem:[%s5154_s12 + $0x40] sm:$0xff] }
  0x2b   : > { %v735_v50 = vsel %vm5190_vm7, %v733_v43, %v734_v33  ;;  %v738_v52 = vsel %vm5190_vm7, %v736_v44, %v737_v39  ;;  %v5304_v53 = vcombine.high %v5287_v40, %v5287_v40  ;;  %v750_v1 = vrot.slane %v5287_v40, 7 }
  0x2c   : > { %v742_v54 = vsel %vm5190_vm7, %v4552_v46, %v741_v47  ;;  %v1000_v56 = vcombine.low %v732_v42, %v735_v50  ;;  %v5310_v57 = vrot.slane %v355_v48, %v5156_v8  ;;  %v743_v58 = vrot.slane %v741_v47, 2 }
  0x2d   : > { %v999_v61 = vcombine.low %v991_v45, %v998_v49  ;;  %v1001_v63 = vcombine.low %v738_v52, %v742_v54  ;;  %v753_v2 = vrot.slane %v5304_v53, 7  ;;  %v379_v7 = vcombine.high %v227_v4, %v227_v4 }
  0x2e   : > { %v1008_v3 = vrot.slane %v1000_v56, %v5156_v8  ;;  %v5320_v5 = vcombine.high %v5310_v57, %v5310_v57  ;;  %v744_v6 = vrot.slane %v5310_v57, 7  ;;  %v752_v10 = vrot.slane %v750_v1, 2 }
  0x2f   : > { %4796 = vmatprep.mubr.msk.f32.mxu1 %vm1289_vm8, %v999_v61  ;;  %v1015_v9 = vrot.slane %v1001_v63, %v5156_v8  ;;  %v5326_v13 = vrot.slane %v227_v4, %v5156_v8  ;;  %v766_v15 = vrot.slane %v5313_v60, 7  ;;  %v5333_v20 = vrot.slane %v379_v7, %v5156_v8  ;;  %v231_v7 = vld [vmem:[%s5154_s12 + $0x60] sm:$0xff] }
  0x30   : > { %v745_v16 = vsel %vm5190_vm7, %v743_v58, %v744_v6  ;;  %v746_v17 = vrot.slane %v744_v6, 2  ;;  %v747_v19 = vrot.slane %v5320_v5, 7  ;;  %v754_v30 = vsel %vm5190_vm7, %v752_v10, %v753_v2 }
  0x31   : > { %v1016_v29 = vcombine.low %v1008_v3, %v1015_v9  ;;  %v5340_v32 = vcombine.high %v5326_v13, %v5326_v13  ;;  %v4553_v33 = vrot.slane %v5326_v13, 9  ;;  %v5347_v39 = vcombine.high %v5333_v20, %v5333_v20 }
  0x32   : > { %v748_v36 = vsel %vm5190_vm7, %v746_v17, %v747_v19  ;;  %v749_v37 = vrot.slane %v747_v19, 2  ;;  %v760_v41 = vrot.slane %v5333_v20, 7  ;;  %v403_v44 = vcombine.high %v229_v26, %v229_v26 }
  0x33   : > { %4797 = vmatmul.mubr.msk.f32.gmra.mxu1 %vm1289_vm8, %v1016_v29  ;;  %v1017_v42 = vcombine.low %v745_v16, %v748_v36  ;;  %v757_v43 = vrot.slane %v5340_v32, 7  ;;  %v5353_v45 = vrot.slane %v229_v26, %v5156_v8  ;;  %v763_v48 = vrot.slane %v5347_v39, 7 }
  0x34   : > { %v751_v46 = vsel %vm5190_vm7, %v749_v37, %v750_v1  ;;  %v762_v47 = vrot.slane %v760_v41, 2  ;;  %v672_v49 = vcombine.high %v5313_v60, %v5313_v60  ;;  %v5366_v61 = vrot.slane %v403_v44, %v5156_v8 }
  0x35   : > { %v1018_v50 = vcombine.low %v751_v46, %v754_v30  ;;  %v1025_v52 = vrot.slane %v1017_v42, %v5156_v8  ;;  %v758_v4 = vsel %vm5190_vm7, %v4553_v33, %v757_v43  ;;  %v759_v54 = vrot.slane %v757_v43, 2  ;;  %v5387_v33 = vld.sshfl [vmem:[%s5154_s12 + $0x58] sm:$0x33 pattern:$0x76325410] }
  0x36   : > { %v764_v56 = vsel %vm5190_vm7, %v762_v47, %v763_v48  ;;  %v765_v58 = vrot.slane %v763_v48, 2  ;;  %v5370_v63 = vcombine.high %v5353_v45, %v5353_v45  ;;  %v768_v3 = vrot.slane %v766_v15, 2 }
  0x37   : > { %v1032_v1 = vrot.slane %v1018_v50, %v5156_v8  ;;  %v761_v2 = vsel %vm5190_vm7, %v759_v54, %v760_v41  ;;  %v769_v6 = vrot.slane %v672_v49, 7  ;;  %v5380_v16 = vcombine.high %v5366_v61, %v5366_v61 }
  0x38   : > { %v767_v9 = vsel %vm5190_vm7, %v765_v58, %v766_v15  ;;  %v1034_v10 = vcombine.low %v758_v4, %v761_v2  ;;  %v4554_v17 = vrot.slane %v5353_v45, 9  ;;  %v773_v30 = vrot.slane %v5370_v63, 7 }
  0x39   : > { %v1033_v19 = vcombine.low %v1025_v52, %v1032_v1  ;;  %v1035_v26 = vcombine.low %v764_v56, %v767_v9  ;;  %v770_v29 = vsel %vm5190_vm7, %v768_v3, %v769_v6  ;;  %v776_v15 = vrot.slane %v5366_v61, 7  ;;  %v5418_v6 = vld.sshfl [vmem:[%s5154_s12 + $0x68] sm:$0x33 pattern:$0x76325410] }
  0x3a   : > { %v1042_v36 = vrot.slane %v1034_v10, %v5156_v8  ;;  %v779_v37 = vrot.slane %v5380_v16, 7  ;;  %v427_v41 = vcombine.high %v231_v7, %v231_v7  ;;  %v774_v43 = vsel %vm5190_vm7, %v4554_v17, %v773_v30  ;;  %6800 = vst [vmem:[#allocation3_spill] sm:$0xff] %v5418_v6 }
  0x3b   : > { %4799 = vmatprep.mubr.msk.f32.mxu1 %vm1289_vm8, %v1033_v19  ;;  %v1049_v42 = vrot.slane %v1035_v26, %v5156_v8  ;;  %v775_v44 = vrot.slane %v773_v30, 2  ;;  %v5397_v46 = vrot.slane %v231_v7, %v5156_v8  ;;  %v778_v47 = vrot.slane %v776_v15, 2  ;;  %v233_v19 = vld [vmem:[%s5154_s12 + $0x70] sm:$0xff] }
  0x3c   : > { %v1051_v48 = vcombine.low %v770_v29, %v774_v43  ;;  %v5400_v49 = vrot.slane %v427_v41, %v5156_v8  ;;  %v5404_v50 = vcombine.high %v5387_v33, %v5387_v33  ;;  %v781_v56 = vrot.slane %v779_v37, 2 }
  0x3d   : > { %v1050_v52 = vcombine.low %v1042_v36, %v1049_v42  ;;  %v777_v4 = vsel %vm5190_vm7, %v775_v44, %v776_v15  ;;  %v5410_v54 = vcombine.high %v5397_v46, %v5397_v46  ;;  %v780_v58 = vsel %vm5190_vm7, %v778_v47, %v779_v37 }
  0x3e   : > { %v1059_v1 = vrot.slane %v1051_v48, %v5156_v8  ;;  %v782_v2 = vrot.slane %v5387_v33, 7  ;;  %v785_v3 = vrot.slane %v5404_v50, 7  ;;  %v1052_v7 = vcombine.low %v777_v4, %v780_v58 }
  0x3f   : > { %4800 = vmatmul.mubr.msk.f32.gmra.mxu1 %vm1289_vm8, %v1050_v52  ;;  %v4555_v9 = vrot.slane %v5397_v46, 9  ;;  %v789_v10 = vrot.slane %v5410_v54, 7  ;;  %v792_v17 = vrot.slane %v5400_v49, 7  ;;  %v5429_v30 = vcombine.high %v5400_v49, %v5400_v49 }
  0x40   : > { %v783_v26 = vsel %vm5190_vm7, %v781_v56, %v782_v2  ;;  %v784_v29 = vrot.slane %v782_v2, 2  ;;  %v5432_v36 = vrot.slane %v233_v19, %v5156_v8  ;;  %v1066_v15 = vrot.slane %v1052_v7, %v5156_v8  ;;  %v5450_v2 = vld.sshfl [vmem:[%s5154_s12 + $0x78] sm:$0x33 pattern:$0x76325410] }
  0x41   : > { %v790_v37 = vsel %vm5190_vm7, %v4555_v9, %v789_v10  ;;  %v791_v41 = vrot.slane %v789_v10, 2  ;;  %v674_v42 = vcombine.high %v5418_v6, %v5418_v6  ;;  %v794_v47 = vrot.slane %v792_v17, 2  ;;  %6803 = vst [vmem:[#allocation6_spill] sm:$0xff] %v5450_v2 }
  0x42   : > { %6801 = vst [vmem:[#allocation4_spill] sm:$0xff] %v5432_v36  ;;  %v786_v43 = vsel %vm5190_vm7, %v784_v29, %v785_v3  ;;  %v5443_v44 = vcombine.high %v5432_v36, %v5432_v36  ;;  %v795_v48 = vrot.slane %v5429_v30, 7  ;;  %v1067_v52 = vcombine.low %v1059_v1, %v1066_v15 }
  0x43   : > { %v793_v4 = vsel %vm5190_vm7, %v791_v41, %v792_v17  ;;  %v1068_v56 = vcombine.low %v783_v26, %v786_v43  ;;  %v798_v58 = vrot.slane %v5418_v6, 7  ;;  %v801_v10 = vrot.slane %v674_v42, 7  ;;  %v235_v42 = vld [vmem:[%s5154_s12 + $0x80] sm:$0xff] }
  0x44   : > { %6802 = vst [vmem:[#allocation5_spill] sm:$0xff] %v5443_v44  ;;  %v1069_v7 = vcombine.low %v790_v37, %v793_v4  ;;  %v796_v3 = vsel %vm5190_vm7, %v794_v47, %v795_v48  ;;  %v797_v9 = vrot.slane %v795_v48, 2  ;;  %4802 = vmatprep.mubr.msk.f32.mxu1 %vm1289_vm8, %v1067_v52  ;;  %v4556_v17 = vrot.slane %v5432_v36, 9 }
  0x45   : > { %v1076_v29 = vrot.slane %v1068_v56, %v5156_v8  ;;  %v800_v1 = vrot.slane %v798_v58, 2  ;;  %v805_v26 = vrot.slane %v5443_v44, 7  ;;  %v451_v41 = vcombine.high %v233_v19, %v233_v19 }
  0x46   : > { %v1083_v15 = vrot.slane %v1069_v7, %v5156_v8  ;;  %v799_v37 = vsel %vm5190_vm7, %v797_v9, %v798_v58  ;;  %v5463_v43 = vcombine.high %v5450_v2, %v5450_v2  ;;  %v814_v19 = vrot.slane %v5450_v2, 7  ;;  %v5475_v58 = vld.sshfl [vmem:[%s5154_s12 + $0x88] sm:$0x33 pattern:$0x76325410] }
  0x47   : > { %v802_v47 = vsel %vm5190_vm7, %v800_v1, %v801_v10  ;;  %v806_v48 = vsel %vm5190_vm7, %v4556_v17, %v805_v26  ;;  %v1085_v52 = vcombine.low %v796_v3, %v799_v37  ;;  %v807_v4 = vrot.slane %v805_v26, 2  ;;  %6806 = vst [vmem:[#allocation9_spill] sm:$0xff] %v5475_v58 }
  0x48   : > { %6804 = vst [vmem:[#allocation7_spill] sm:$0xff] %v5463_v43  ;;  %v1084_v56 = vcombine.low %v1076_v29, %v1083_v15  ;;  %v1086_v55 = vcombine.low %v802_v47, %v806_v48  ;;  %v5471_v7 = vrot.slane %v451_v41, %v5156_v8  ;;  %v817_v44 = vrot.slane %v5463_v43, 7  ;;  %v237_v47 = vld [vmem:[%s5154_s12 + $0x90] sm:$0xff] }
  0x49   : > { %v1093_v9 = vrot.slane %v1085_v52, %v5156_v8  ;;  %v475_v10 = vcombine.high %v235_v42, %v235_v42  ;;  %v5480_v1 = vrot.slane %v235_v42, %v5156_v8  ;;  %v816_v26 = vrot.slane %v814_v19, 2 }
  0x4a   : > { %6805 = vst [vmem:[#allocation8_spill] sm:$0xff] %v5471_v7  ;;  %4803 = vmatmul.mubr.msk.f32.gmra.mxu1 %vm1289_vm8, %v1084_v56  ;;  %v1100_v3 = vrot.slane %v1086_v55, %v5156_v8  ;;  %v5486_v29 = vcombine.high %v5471_v7, %v5471_v7  ;;  %v808_v17 = vrot.slane %v5471_v7, 7  ;;  %v830_v42 = vrot.slane %v5475_v58, 7 }
  0x4b   : > { %6807 = vst [vmem:[#allocation10_spill] sm:$0xff] %v5480_v1  ;;  %v5490_v15 = vrot.slane %v475_v10, %v5156_v8  ;;  %v5494_v37 = vcombine.high %v5480_v1, %v5480_v1  ;;  %v4557_v41 = vrot.slane %v5480_v1, 9  ;;  %v818_v10 = vsel %vm5190_vm7, %v816_v26, %v817_v44 }
  0x4c   : > { %6808 = vst [vmem:[#allocation11_spill] sm:$0xff] %v5486_v29  ;;  %v1101_v55 = vcombine.low %v1093_v9, %v1100_v3  ;;  %v809_v48 = vsel %vm5190_vm7, %v807_v4, %v808_v17  ;;  %v810_v52 = vrot.slane %v808_v17, 2  ;;  %v811_v56 = vrot.slane %v5486_v29, 7 }
  0x4d   : > { %6809 = vst [vmem:[#allocation12_spill] sm:$0xff] %v5490_v15  ;;  %6810 = vst [vmem:[#allocation13_spill] sm:$0xff] %v5494_v37  ;;  %v5506_v43 = vcombine.high %v5490_v15, %v5490_v15  ;;  %v821_v2 = vrot.slane %v5494_v37, 7  ;;  %v824_v1 = vrot.slane %v5490_v15, 7  ;;  %v499_v3 = vcombine.high %v237_v47, %v237_v47 }
  0x4e   : > { %4805 = vmatprep.mubr.msk.f32.mxu1 %vm1289_vm8, %v1101_v55  ;;  %v812_v9 = vsel %vm5190_vm7, %v810_v52, %v811_v56  ;;  %v813_v4 = vrot.slane %v811_v56, 2  ;;  %v5514_v17 = vrot.slane %v237_v47, %v5156_v8 }
  0x4f   : > { %6811 = vst [vmem:[#allocation14_spill] sm:$0xff] %v5506_v43  ;;  %v1102_v29 = vcombine.low %v809_v48, %v812_v9  ;;  %v822_v44 = vsel %vm5190_vm7, %v4557_v41, %v821_v2  ;;  %v823_v26 = vrot.slane %v821_v2, 2  ;;  %v826_v7 = vrot.slane %v824_v1, 2 }
  0x50   : > { %6812 = vst [vmem:[#allocation15_spill] sm:$0xff] %v5514_v17  ;;  %v815_v37 = vsel %vm5190_vm7, %v813_v4, %v814_v19  ;;  %v827_v55 = vrot.slane %v5506_v43, 7  ;;  %v5522_v15 = vrot.slane %v499_v3, %v5156_v8  ;;  %v5526_v52 = vcombine.high %v5514_v17, %v5514_v17  ;;  %v239_v43 = vld [vmem:[%s5154_s12 + $0xa0] sm:$0xff] }
  0x51   : > { %v1103_v47 = vcombine.low %v815_v37, %v818_v10  ;;  %v1110_v48 = vrot.slane %v1102_v29, %v5156_v8  ;;  %v825_v2 = vsel %vm5190_vm7, %v823_v26, %v824_v1  ;;  %v676_v19 = vcombine.high %v5475_v58, %v5475_v58 }
  0x52   : > { %6813 = vst [vmem:[#allocation16_spill] sm:$0xff] %v5522_v15  ;;  %6814 = vst [vmem:[#allocation17_spill] sm:$0xff] %v5526_v52  ;;  %v828_v41 = vsel %vm5190_vm7, %v826_v7, %v827_v55  ;;  %v829_v56 = vrot.slane %v827_v55, 2  ;;  %v1119_v9 = vcombine.low %v822_v44, %v825_v2  ;;  %v5537_v4 = vcombine.high %v5522_v15, %v5522_v15 }
  0x53   : > { %v1117_v37 = vrot.slane %v1103_v47, %v5156_v8  ;;  %v832_v10 = vrot.slane %v830_v42, 2  ;;  %v833_v29 = vrot.slane %v676_v19, 7  ;;  %v4558_v3 = vrot.slane %v5514_v17, 9 }
  0x54   : > { %6815 = vst [vmem:[#allocation18_spill] sm:$0xff] %v5537_v4  ;;  %v831_v1 = vsel %vm5190_vm7, %v829_v56, %v830_v42  ;;  %v1127_v26 = vrot.slane %v1119_v9, %v5156_v8  ;;  %v837_v7 = vrot.slane %v5526_v52, 7  ;;  %v840_v44 = vrot.slane %v5522_v15, 7 }
  0x55   : > { %v5548_v55 = vld.sshfl [vmem:[%s5154_s12 + $0x98] sm:$0x33 pattern:$0x76325410]  ;;  %v1118_v2 = vcombine.low %v1110_v48, %v1117_v37  ;;  %v1120_v58 = vcombine.low %v828_v41, %v831_v1  ;;  %v834_v47 = vsel %vm5190_vm7, %v832_v10, %v833_v29  ;;  %v843_v19 = vrot.slane %v5537_v4, 7  ;;  %v241_v1 = vld [vmem:[%s5154_s12 + $0xb0] sm:$0xff] }
  0x56   : > { %6816 = vst [vmem:[#allocation19_spill] sm:$0xff] %v5548_v55  ;;  %v838_v17 = vsel %vm5190_vm7, %v4558_v3, %v837_v7  ;;  %v839_v42 = vrot.slane %v837_v7, 2  ;;  %v842_v56 = vrot.slane %v840_v44, 2  ;;  %v523_v9 = vcombine.high %v239_v43, %v239_v43 }
  0x57   : > { %4806 = vmatmul.mubr.msk.f32.gmra.mxu1 %vm1289_vm8, %v1118_v2  ;;  %v1134_v52 = vrot.slane %v1120_v58, %v5156_v8  ;;  %v1136_v15 = vcombine.low %v834_v47, %v838_v17  ;;  %v5558_v48 = vrot.slane %v239_v43, %v5156_v8  ;;  %v5562_v41 = vcombine.high %v5548_v55, %v5548_v55  ;;  %v5578_v2 = vld.sshfl [vmem:[%s5154_s12 + $0xa8] sm:$0x33 pattern:$0x76325410] }
  0x58   : > { %v841_v37 = vsel %vm5190_vm7, %v839_v42, %v840_v44  ;;  %v844_v10 = vsel %vm5190_vm7, %v842_v56, %v843_v19  ;;  %v5569_v29 = vrot.slane %v523_v9, %v5156_v8  ;;  %v845_v3 = vrot.slane %v843_v19, 2  ;;  %6821 = vst [vmem:[#allocation24_spill] sm:$0xff] %v5578_v2 }
  0x59   : > { %6817 = vst [vmem:[#allocation20_spill] sm:$0xff] %v5558_v48  ;;  %6818 = vst [vmem:[#allocation21_spill] sm:$0xff] %v5562_v41  ;;  %v1135_v58 = vcombine.low %v1127_v26, %v1134_v52  ;;  %v1137_v17 = vcombine.low %v841_v37, %v844_v10  ;;  %v1144_v43 = vrot.slane %v1136_v15, %v5156_v8  ;;  %v846_v44 = vrot.slane %v5548_v55, 7 }
  0x5a   : > { %6819 = vst [vmem:[#allocation22_spill] sm:$0xff] %v5569_v29  ;;  %v5575_v7 = vcombine.high %v5558_v48, %v5558_v48  ;;  %v849_v47 = vrot.slane %v5562_v41, 7  ;;  %v4559_v42 = vrot.slane %v5558_v48, 9  ;;  %v856_v19 = vrot.slane %v5569_v29, 7 }
  0x5b   : > { %4808 = vmatprep.mubr.msk.f32.mxu1 %vm1289_vm8, %v1135_v58  ;;  %v1151_v52 = vrot.slane %v1137_v17, %v5156_v8  ;;  %v5589_v26 = vcombine.high %v5569_v29, %v5569_v29  ;;  %v5592_v56 = vrot.slane %v241_v1, %v5156_v8  ;;  %v847_v9 = vsel %vm5190_vm7, %v845_v3, %v846_v44 }
  0x5c   : > { %6820 = vst [vmem:[#allocation23_spill] sm:$0xff] %v5575_v7  ;;  %v853_v15 = vrot.slane %v5575_v7, 7  ;;  %v848_v37 = vrot.slane %v846_v44, 2  ;;  %v678_v10 = vcombine.high %v5578_v2, %v5578_v2  ;;  %v858_v41 = vrot.slane %v856_v19, 2 }
  0x5d   : > { %6822 = vst [vmem:[#allocation25_spill] sm:$0xff] %v5589_v26  ;;  %6823 = vst [vmem:[#allocation26_spill] sm:$0xff] %v5592_v56  ;;  %v1152_v58 = vcombine.low %v1144_v43, %v1151_v52  ;;  %v5602_v29 = vcombine.high %v5592_v56, %v5592_v56  ;;  %v5605_v7 = vld.sshfl [vmem:[%s5154_s12 + $0xb8] sm:$0x33 pattern:$0x76325410] }
  0x5e   : > { %v854_v17 = vsel %vm5190_vm7, %v4559_v42, %v853_v15  ;;  %v855_v48 = vrot.slane %v853_v15, 2  ;;  %6825 = vst [vmem:[#allocation28_spill] sm:$0xff] %v5605_v7  ;;  %v850_v55 = vsel %vm5190_vm7, %v848_v37, %v849_v47  ;;  %v859_v3 = vrot.slane %v5589_v26, 7 }
  0x5f   : > { %6824 = vst [vmem:[#allocation27_spill] sm:$0xff] %v5602_v29  ;;  %v862_v44 = vrot.slane %v5578_v2, 7  ;;  %v865_v4 = vrot.slane %v678_v10, 7  ;;  %4809 = vmatmul.mubr.msk.f32.gmra.mxu1 %vm1289_vm8, %v1152_v58  ;;  %v1153_v42 = vcombine.low %v847_v9, %v850_v55  ;;  %v4560_v52 = vrot.slane %v5592_v56, 9  ;;  %v243_v55 = vld [vmem:[%s5154_s12 + $0xc0] sm:$0xff] }
  0x60   : > { %v857_v43 = vsel %vm5190_vm7, %v855_v48, %v856_v19  ;;  %v869_v15 = vrot.slane %v5602_v29, 7  ;;  %v860_v47 = vsel %vm5190_vm7, %v858_v41, %v859_v3  ;;  %v861_v37 = vrot.slane %v859_v3, 2 }
  0x61   : > { %v1154_v6 = vcombine.low %v854_v17, %v857_v43  ;;  %v864_v26 = vrot.slane %v862_v44, 2  ;;  %v1161_v36 = vrot.slane %v1153_v42, %v5156_v8  ;;  %v547_v58 = vcombine.high %v241_v1, %v241_v1 }
  0x62   : > { %v870_v10 = vsel %vm5190_vm7, %v4560_v52, %v869_v15  ;;  %v5623_v48 = vcombine.high %v5605_v7, %v5605_v7  ;;  %v863_v9 = vsel %vm5190_vm7, %v861_v37, %v862_v44  ;;  %v871_v17 = vrot.slane %v869_v15, 2  ;;  %v5649_v37 = vld.sshfl [vmem:[%s5154_s12 + $0xc8] sm:$0x33 pattern:$0x76325410] }
  0x63   : > { %v1168_v19 = vrot.slane %v1154_v6, %v5156_v8  ;;  %v866_v41 = vsel %vm5190_vm7, %v864_v26, %v865_v4  ;;  %v1170_v3 = vcombine.low %v860_v47, %v863_v9  ;;  %v5632_v1 = vrot.slane %v547_v58, %v5156_v8  ;;  %v245_v47 = vld [vmem:[%s5154_s12 + $0xd0] sm:$0xff]  ;;  %6830 = vst [vmem:[#allocation33_spill] sm:$0xff] %v5649_v37 }
  0x64   : > { %6826 = vst [vmem:[#allocation29_spill] sm:$0xff] %v5623_v48  ;;  %v1171_v43 = vcombine.low %v866_v41, %v870_v10  ;;  %v878_v42 = vrot.slane %v5605_v7, 7  ;;  %v881_v29 = vrot.slane %v5623_v48, 7  ;;  %v571_v6 = vcombine.high %v243_v55, %v243_v55 }
  0x65   : > { %6827 = vst [vmem:[#allocation30_spill] sm:$0xff] %v5632_v1  ;;  %v1169_v52 = vcombine.low %v1161_v36, %v1168_v19  ;;  %v5637_v2 = vrot.slane %v243_v55, %v5156_v8  ;;  %v1178_v44 = vrot.slane %v1170_v3, %v5156_v8  ;;  %v5643_v26 = vcombine.high %v5632_v1, %v5632_v1  ;;  %v5711_v7 = vld.sshfl [vmem:[%s5154_s12 + $0xd8] sm:$0x33 pattern:$0x76325410] }
  0x66   : > { %v1185_v4 = vrot.slane %v1171_v43, %v5156_v8  ;;  %v872_v15 = vrot.slane %v5632_v1, 7  ;;  %v880_v36 = vrot.slane %v878_v42, 2  ;;  %v5652_v10 = vrot.slane %v571_v6, %v5156_v8  ;;  %6838 = vst [vmem:[#allocation41_spill] sm:$0xff] %v5711_v7 }
  0x67   : > { %6828 = vst [vmem:[#allocation31_spill] sm:$0xff] %v5637_v2  ;;  %6829 = vst [vmem:[#allocation32_spill] sm:$0xff] %v5643_v26  ;;  %4811 = vmatprep.mubr.msk.f32.mxu1 %vm1289_vm8, %v1169_v52  ;;  %v5656_v58 = vcombine.high %v5637_v2, %v5637_v2  ;;  %v4561_v55 = vrot.slane %v5637_v2, 9  ;;  %v875_v3 = vrot.slane %v5643_v26, 7 }
  0x68   : > { %6831 = vst [vmem:[#allocation34_spill] sm:$0xff] %v5652_v10  ;;  %v1186_v19 = vcombine.low %v1178_v44, %v1185_v4  ;;  %v873_v9 = vsel %vm5190_vm7, %v871_v17, %v872_v15  ;;  %v874_v41 = vrot.slane %v872_v15, 2  ;;  %v882_v43 = vsel %vm5190_vm7, %v880_v36, %v881_v29 }
  0x69   : > { %6832 = vst [vmem:[#allocation35_spill] sm:$0xff] %v5656_v58  ;;  %v5666_v52 = vcombine.high %v5652_v10, %v5652_v10  ;;  %v885_v6 = vrot.slane %v5656_v58, 7  ;;  %v888_v48 = vrot.slane %v5652_v10, 7  ;;  %v877_v17 = vrot.slane %v875_v3, 2 }
  0x6a   : > { %4812 = vmatmul.mubr.msk.f32.gmra.mxu1 %vm1289_vm8, %v1186_v19  ;;  %v876_v44 = vsel %vm5190_vm7, %v874_v41, %v875_v3  ;;  %v894_v4 = vrot.slane %v5649_v37, 7  ;;  %v595_v15 = vcombine.high %v245_v47, %v245_v47  ;;  %v5680_v19 = vrot.slane %v245_v47, %v5156_v8 }
  0x6b   : > { %6833 = vst [vmem:[#allocation36_spill] sm:$0xff] %v5666_v52  ;;  %v1187_v2 = vcombine.low %v873_v9, %v876_v44  ;;  %v886_v29 = vsel %vm5190_vm7, %v4561_v55, %v885_v6  ;;  %v887_v36 = vrot.slane %v885_v6, 2  ;;  %v890_v26 = vrot.slane %v888_v48, 2 }
  0x6c   : > { %v879_v58 = vsel %vm5190_vm7, %v877_v17, %v878_v42  ;;  %v891_v10 = vrot.slane %v5666_v52, 7  ;;  %6834 = vst [vmem:[#allocation37_spill] sm:$0xff] %v5680_v19  ;;  %v5683_v41 = vrot.slane %v595_v15, %v5156_v8  ;;  %v680_v6 = vcombine.high %v5649_v37, %v5649_v37  ;;  %v247_v15 = vld [vmem:[%s5154_s12 + $0xe0] sm:$0xff] }
  0x6d   : > { %v1188_v3 = vcombine.low %v879_v58, %v882_v43  ;;  %v1195_v9 = vrot.slane %v1187_v2, %v5156_v8  ;;  %v889_v55 = vsel %vm5190_vm7, %v887_v36, %v888_v48  ;;  %v5694_v47 = vcombine.high %v5680_v19, %v5680_v19 }
  0x6e   : > { %6835 = vst [vmem:[#allocation38_spill] sm:$0xff] %v5683_v41  ;;  %v892_v42 = vsel %vm5190_vm7, %v890_v26, %v891_v10  ;;  %v893_v44 = vrot.slane %v891_v10, 2  ;;  %v1204_v17 = vcombine.low %v886_v29, %v889_v55  ;;  %v5699_v2 = vcombine.high %v5683_v41, %v5683_v41 }
  0x6f   : > { %6836 = vst [vmem:[#allocation39_spill] sm:$0xff] %v5694_v47  ;;  %v1202_v58 = vrot.slane %v1188_v3, %v5156_v8  ;;  %v896_v48 = vrot.slane %v894_v4, 2  ;;  %v897_v43 = vrot.slane %v680_v6, 7  ;;  %v4562_v10 = vrot.slane %v5680_v19, 9 }
  0x70   : > { %6837 = vst [vmem:[#allocation40_spill] sm:$0xff] %v5699_v2  ;;  %v895_v36 = vsel %vm5190_vm7, %v893_v44, %v894_v4  ;;  %v1212_v26 = vrot.slane %v1204_v17, %v5156_v8  ;;  %v901_v29 = vrot.slane %v5694_v47, 7  ;;  %v904_v52 = vrot.slane %v5683_v41, 7 }
  0x71   : > { %v1203_v55 = vcombine.low %v1195_v9, %v1202_v58  ;;  %v1205_v37 = vcombine.low %v892_v42, %v895_v36  ;;  %v898_v3 = vsel %vm5190_vm7, %v896_v48, %v897_v43  ;;  %v907_v4 = vrot.slane %v5699_v2, 7  ;;  %v249_v2 = vld [vmem:[%s5154_s12 + $0xf0] sm:$0xff] }
  0x72   : > { %v902_v6 = vsel %vm5190_vm7, %v4562_v10, %v901_v29  ;;  %v903_v1 = vrot.slane %v901_v29, 2  ;;  %v619_v44 = vcombine.high %v247_v15, %v247_v15  ;;  %v906_v42 = vrot.slane %v904_v52, 2 }
  0x73   : > { %4814 = vmatprep.mubr.msk.f32.mxu1 %vm1289_vm8, %v1203_v55  ;;  %v1219_v9 = vrot.slane %v1205_v37, %v5156_v8  ;;  %v1221_v17 = vcombine.low %v898_v3, %v902_v6  ;;  %v5719_v58 = vrot.slane %v247_v15, %v5156_v8  ;;  %v5728_v36 = vcombine.high %v5711_v7, %v5711_v7  ;;  %v5738_v3 = vld.sshfl [vmem:[%s5154_s12 + $0xe8] sm:$0x33 pattern:$0x76325410] }
  0x74   : > { %v905_v48 = vsel %vm5190_vm7, %v903_v1, %v904_v52  ;;  %v5724_v43 = vrot.slane %v619_v44, %v5156_v8  ;;  %v909_v10 = vrot.slane %v907_v4, 2  ;;  %v908_v37 = vsel %vm5190_vm7, %v906_v42, %v907_v4  ;;  %6843 = vst [vmem:[#allocation46_spill] sm:$0xff] %v5738_v3 }
  0x75   : > { %6839 = vst [vmem:[#allocation42_spill] sm:$0xff] %v5719_v58  ;;  %6841 = vst [vmem:[#allocation44_spill] sm:$0xff] %v5728_v36  ;;  %v1220_v29 = vcombine.low %v1212_v26, %v1219_v9  ;;  %v1229_v55 = vrot.slane %v1221_v17, %v5156_v8  ;;  %v5735_v15 = vcombine.high %v5719_v58, %v5719_v58  ;;  %v910_v52 = vrot.slane %v5711_v7, 7 }
  0x76   : > { %6840 = vst [vmem:[#allocation43_spill] sm:$0xff] %v5724_v43  ;;  %v1222_v1 = vcombine.low %v905_v48, %v908_v37  ;;  %v913_v6 = vrot.slane %v5728_v36, 7  ;;  %v4563_v44 = vrot.slane %v5719_v58, 9  ;;  %v920_v4 = vrot.slane %v5724_v43, 7 }
  0x77   : > { %6842 = vst [vmem:[#allocation45_spill] sm:$0xff] %v5735_v15  ;;  %4815 = vmatmul.mubr.msk.f32.gmra.mxu1 %vm1289_vm8, %v1220_v29  ;;  %v917_v26 = vrot.slane %v5735_v15, 7  ;;  %v5749_v9 = vcombine.high %v5724_v43, %v5724_v43  ;;  %v5752_v42 = vrot.slane %v249_v2, %v5156_v8  ;;  %v911_v48 = vsel %vm5190_vm7, %v909_v10, %v910_v52 }
  0x78   : > { %v1236_v17 = vrot.slane %v1222_v1, %v5156_v8  ;;  %v912_v37 = vrot.slane %v910_v52, 2  ;;  %v682_v29 = vcombine.high %v5738_v3, %v5738_v3  ;;  %v922_v15 = vrot.slane %v920_v4, 2  ;;  %v5770_v52 = vld.sshfl [vmem:[%s5154_s12 + $0xf8] sm:$0x33 pattern:$0x76325410] }
  0x79   : > { %6844 = vst [vmem:[#allocation47_spill] sm:$0xff] %v5749_v9  ;;  %v918_v36 = vsel %vm5190_vm7, %v4563_v44, %v917_v26  ;;  %v919_v58 = vrot.slane %v917_v26, 2  ;;  %v5763_v43 = vcombine.high %v5752_v42, %v5752_v42  ;;  %v923_v47 = vrot.slane %v5749_v9, 7 }
  0x7a   : > { %v1237_v7 = vcombine.low %v1229_v55, %v1236_v17  ;;  %v914_v1 = vsel %vm5190_vm7, %v912_v37, %v913_v6  ;;  %v926_v10 = vrot.slane %v5738_v3, 7  ;;  %v929_v26 = vrot.slane %v682_v29, 7 }
  0x7b   : > { %v921_v41 = vsel %vm5190_vm7, %v919_v58, %v920_v4  ;;  %v1238_v44 = vcombine.low %v911_v48, %v914_v1  ;;  %v4564_v19 = vrot.slane %v5752_v42, 9  ;;  %v924_v55 = vsel %vm5190_vm7, %v922_v15, %v923_v47 }
  0x7c   : > { %4817 = vmatprep.mubr.msk.f32.mxu1 %vm1289_vm8, %v1237_v7  ;;  %v1239_v56 = vcombine.low %v918_v36, %v921_v41  ;;  %v925_v6 = vrot.slane %v923_v47, 2  ;;  %v928_v17 = vrot.slane %v926_v10, 2  ;;  %v933_v3 = vrot.slane %v5763_v43, 7 }
  0x7d   : > { %v1246_v37 = vrot.slane %v1238_v44, %v5156_v8  ;;  %v643_v9 = vcombine.high %v249_v2, %v249_v2  ;;  %v5782_v58 = vcombine.high %v5770_v52, %v5770_v52  ;;  %v942_v47 = vrot.slane %v5770_v52, 7 }
  0x7e   : > { %v1253_v4 = vrot.slane %v1239_v56, %v5156_v8  ;;  %v927_v7 = vsel %vm5190_vm7, %v925_v6, %v926_v10  ;;  %v930_v41 = vsel %vm5190_vm7, %v928_v17, %v929_v26  ;;  %v934_v36 = vsel %vm5190_vm7, %v4564_v19, %v933_v3 }
  0x7f   : > { %v1255_v15 = vcombine.low %v924_v55, %v927_v7  ;;  %v5793_v2 = vrot.slane %v643_v9, %v5156_v8  ;;  %v935_v48 = vrot.slane %v933_v3, 2  ;;  %v1256_v1 = vcombine.low %v930_v41, %v934_v36 }
  0x80   : > { %v1254_v29 = vcombine.low %v1246_v37, %v1253_v4  ;;  %v944_v44 = vrot.slane %v942_v47, 2  ;;  %v945_v56 = vrot.slane %v5782_v58, 7  ;;  %v1499_v19 = vcombine.low %v5168_v14, %v5185_v23 }
  0x81   : > { %v1263_v10 = vrot.slane %v1255_v15, %v5156_v8  ;;  %v5799_v26 = vcombine.high %v5793_v2, %v5793_v2  ;;  %v936_v6 = vrot.slane %v5793_v2, 7  ;;  %v1270_v3 = vrot.slane %v1256_v1, %v5156_v8 }
  0x82   : > { %4818 = vmatmul.mubr.msk.f32.gmra.mxu1 %vm1289_vm8, %v1254_v29  ;;  %v946_v9 = vsel %vm5190_vm7, %v944_v44, %v945_v56  ;;  %v1500_v55 = vcombine.low %v5181_v22, %v5205_v31  ;;  %v2049_v17 = vcombine.low %v5185_v23, %v5181_v22  ;;  %v1507_v14 = vrot.slane %v1499_v19, %v5156_v8 }
  0x83   : > { %v937_v37 = vsel %vm5190_vm7, %v935_v48, %v936_v6  ;;  %v938_v4 = vrot.slane %v936_v6, 2  ;;  %v939_v7 = vrot.slane %v5799_v26, 7  ;;  %v1271_v41 = vcombine.low %v1263_v10, %v1270_v3 }
  0x84   : > { %v1514_v36 = vrot.slane %v1500_v55, %v5156_v8  ;;  %v2050_v15 = vcombine.low %v5205_v31, %v5164_v11  ;;  %v2057_v29 = vrot.slane %v2049_v17, %v5156_v8  ;;  %v1516_v23 = vcombine.low %v5164_v11, %v5173_v18 }
  0x85   : > { %v940_v1 = vsel %vm5190_vm7, %v938_v4, %v939_v7  ;;  %v941_v22 = vrot.slane %v939_v7, 2  ;;  %v6845_v48 = vcombine.low %v5200_v28, %v5196_v27  ;;  %4820 = vmatprep.mubr.msk.f32.mxu1 %vm1289_vm8, %v1271_v41  ;;  %v4609_v6 = vcombine.high %v5164_v11, %v5173_v18 }
  0x86   : > { %v1272_v56 = vcombine.low %v937_v37, %v940_v1  ;;  %v1515_v10 = vcombine.low %v1507_v14, %v1514_v36  ;;  %v2064_v31 = vrot.slane %v2050_v15, %v5156_v8  ;;  %v1524_v3 = vrot.slane %v1516_v23, %v5156_v8 }
  0x87   : > { %v1531_v44 = vrot.slane %v6845_v48, %v5156_v8  ;;  %v943_v19 = vsel %vm5190_vm7, %v941_v22, %v942_v47  ;;  %v2067_v55 = vcombine.low %v5196_v27, %v5214_v35  ;;  %v1533_v28 = vcombine.low %v5214_v35, %v5231_v51 }
  0x88   : > { %v1273_v17 = vcombine.low %v943_v19, %v946_v9  ;;  %v1280_v37 = vrot.slane %v1272_v56, %v5156_v8  ;;  %v2065_v4 = vcombine.low %v2057_v29, %v2064_v31  ;;  %v2074_v7 = vrot.slane %v4609_v6, %v5156_v8 }
  0x89   : > { %v1532_v14 = vcombine.low %v1524_v3, %v1531_v44  ;;  %v2081_v11 = vrot.slane %v2067_v55, %v5156_v8  ;;  %v1534_v18 = vcombine.low %v5178_v21, %v5244_v59  ;;  %v1541_v24 = vrot.slane %v1533_v28, %v5156_v8 }
  0x8a   : > { %v1287_v47 = vrot.slane %v1273_v17, %v5156_v8  ;;  %4857 = vmatprep.mubr.msk.f32.mxu0 %vm1289_vm8, %v2065_v4  ;;  %v1550_v27 = vcombine.low %v5210_v34, %v5264_v12  ;;  %v1551_v35 = vcombine.low %v5252_v0, %v5271_v25  ;;  %v2083_v9 = vcombine.low %v5231_v51, %v5249_v62 }
  0x8b   : > { %v2082_v41 = vcombine.low %v2074_v7, %v2081_v11  ;;  %v1548_v36 = vrot.slane %v1534_v18, %v5156_v8  ;;  %v2084_v21 = vcombine.low %v5244_v59, %v5210_v34  ;;  %v2100_v15 = vcombine.low %v5264_v12, %v5252_v0 }
  0x8c   : > { %v1288_v29 = vcombine.low %v1280_v37, %v1287_v47  ;;  %v1558_v1 = vrot.slane %v1550_v27, %v5156_v8  ;;  %v1565_v22 = vrot.slane %v1551_v35, %v5156_v8  ;;  %v2091_v23 = vrot.slane %v2083_v9, %v5156_v8 }
  0x8d   : > { %4858 = vmatmul.mubr.msk.f32.vlgmr.msra.gmra.mxu0 %vm1289_vm8, %v2082_v41  ;;  %v1549_v48 = vcombine.low %v1541_v24, %v1548_v36  ;;  %v2098_v51 = vrot.slane %v2084_v21, %v5156_v8  ;;  %v4610_v62 = vcombine.high %v5252_v0, %v5271_v25  ;;  %v2108_v34 = vrot.slane %v2100_v15, %v5156_v8 }
  0x8e   : > { %4821 = vmatmul.mubr.msk.f32.gmra.mxu1 %vm1289_vm8, %v1288_v29  ;;  %v1566_v59 = vcombine.low %v1558_v1, %v1565_v22  ;;  %v1567_v12 = vcombine.low %v5284_v38, %v5310_v57  ;;  %v1568_v44 = vcombine.low %v5320_v5, %v5287_v40  ;;  %v1584_v56 = vcombine.low %v5326_v13, %v5340_v32  ;;  %v6848_v29 = vld [vmem:[#allocation8_spill] sm:$0xff]  ;;  %v6849_v1 = vld [vmem:[#allocation5_spill] sm:$0xff] }
  0x8f   : > { %4825 = vmatprep.mubr.msk.f32.mxu1 %vm1289_vm8, %v1515_v10  ;;  %v2099_v31 = vcombine.low %v2091_v23, %v2098_v51  ;;  %v2115_v6 = vrot.slane %v4610_v62, %v5156_v8  ;;  %v1585_v0 = vcombine.low %v5333_v20, %v5347_v39  ;;  %v2117_v25 = vcombine.low %v5310_v57, %v5320_v5  ;;  %v6850_v23 = vld [vmem:[#allocation6_spill] sm:$0xff] }
  0x90   : > { %v1575_v19 = vrot.slane %v1567_v12, %v5156_v8  ;;  %v1582_v38 = vrot.slane %v1568_v44, %v5156_v8  ;;  %v1592_v3 = vrot.slane %v1584_v56, %v5156_v8  ;;  %v2118_v13 = vcombine.low %v5287_v40, %v5304_v53 }
  0x91   : > { %4860 = vmatprep.mubr.msk.f32.mxu0 %vm1289_vm8, %v2099_v31  ;;  %v2116_v10 = vcombine.low %v2108_v34, %v2115_v6  ;;  %v1599_v55 = vrot.slane %v1585_v0, %v5156_v8  ;;  %v2125_v28 = vrot.slane %v2117_v25, %v5156_v8  ;;  %v2134_v17 = vcombine.low %v5340_v32, %v5333_v20 }
  0x92   : > { %4826 = vmatmul.mubr.msk.f32.vlgmr.msra.gmra.mxu1 %vm1289_vm8, %v1532_v14  ;;  %v1583_v57 = vcombine.low %v1575_v19, %v1582_v38  ;;  %v2132_v5 = vrot.slane %v2118_v13, %v5156_v8  ;;  %v2135_v37 = vcombine.low %v5347_v39, %v5313_v60  ;;  %v1601_v40 = vcombine.low %v5313_v60, %v5353_v45  ;;  %v6852_v19 = vld [vmem:[#allocation7_spill] sm:$0xff]  ;;  %v6854_v13 = vld [vmem:[#allocation10_spill] sm:$0xff] }
  0x93   : > { %4828 = vmatprep.mubr.msk.f32.mxu1 %vm1289_vm8, %v1549_v48  ;;  %4861 = vmatmul.mubr.msk.f32.gmra.mxu0 %vm1289_vm8, %v2116_v10  ;;  %v1600_v53 = vcombine.low %v1592_v3, %v1599_v55  ;;  %v2142_v4 = vrot.slane %v2134_v17, %v5156_v8  ;;  %v1602_v20 = vcombine.low %v5370_v63, %v5366_v61  ;;  %v6851_v48 = vld [vmem:[#allocation11_spill] sm:$0xff]  ;;  %v6853_v3 = vld [vmem:[#allocation13_spill] sm:$0xff]  ;;  %v6856_v17 = vld [vmem:[#allocation12_spill] sm:$0xff] }
  0x94   : > { %v2133_v32 = vcombine.low %v2125_v28, %v2132_v5  ;;  %v2149_v7 = vrot.slane %v2135_v37, %v5156_v8  ;;  %v1609_v14 = vrot.slane %v1601_v40, %v5156_v8  ;;  %v1618_v39 = vcombine.low %v5380_v16, %v5387_v33  ;;  %v6855_v28 = vld [vmem:[#allocation14_spill] sm:$0xff]  ;;  %v6857_v5 = vld [vmem:[#allocation15_spill] sm:$0xff]  ;;  %v6858_v37 = vld [vmem:[#allocation9_spill] sm:$0xff] }
  0x95   : > { %v1616_v11 = vrot.slane %v1602_v20, %v5156_v8  ;;  %v1619_v18 = vcombine.low %v5397_v46, %v5410_v54  ;;  %v4611_v24 = vcombine.high %v5313_v60, %v5353_v45  ;;  %v2152_v47 = vcombine.low %v5366_v61, %v5380_v16 }
  0x96   : > { %4829 = vmatmul.mubr.msk.f32.gmra.mxu1 %vm1289_vm8, %v1566_v59  ;;  %4863 = vmatprep.mubr.msk.f32.mxu0 %vm1289_vm8, %v2133_v32  ;;  %v2150_v63 = vcombine.low %v2142_v4, %v2149_v7  ;;  %v1626_v27 = vrot.slane %v1618_v39, %v5156_v8  ;;  %v2168_v35 = vcombine.low %v5387_v33, %v5404_v50  ;;  %v6846_v33 = vld [vmem:[#allocation4_spill] sm:$0xff]  ;;  %v6847_v50 = vld [vmem:[#allocation3_spill] sm:$0xff]  ;;  %v6860_v7 = vld [vmem:[#allocation17_spill] sm:$0xff] }
  0x97   : > { %4831 = vmatprep.mubr.msk.f32.mxu1 %vm1289_vm8, %v1583_v57  ;;  %v1617_v9 = vcombine.low %v1609_v14, %v1616_v11  ;;  %v1633_v46 = vrot.slane %v1619_v18, %v5156_v8  ;;  %v2159_v60 = vrot.slane %v4611_v24, %v5156_v8  ;;  %v2166_v45 = vrot.slane %v2152_v47, %v5156_v8  ;;  %v6859_v32 = vld [vmem:[#allocation16_spill] sm:$0xff] }
  0x98   : > { %4864 = vmatmul.mubr.msk.f32.gmra.mxu0 %vm1289_vm8, %v2150_v63  ;;  %v2169_v61 = vcombine.low %v5410_v54, %v5400_v49  ;;  %v2176_v16 = vrot.slane %v2168_v35, %v5156_v8  ;;  %v1635_v41 = vcombine.low %v5400_v49, %v5429_v30  ;;  %v1636_v36 = vcombine.low %v6847_v50, %v6846_v33  ;;  %v6861_v35 = vld [vmem:[#allocation18_spill] sm:$0xff] }
  0x99   : > { %v1634_v21 = vcombine.low %v1626_v27, %v1633_v46  ;;  %v2167_v15 = vcombine.low %v2159_v60, %v2166_v45  ;;  %v1652_v22 = vcombine.low %v6849_v1, %v6848_v29  ;;  %v1653_v51 = vcombine.low %v6851_v48, %v6850_v23 }
  0x9a   : > { %4832 = vmatmul.mubr.msk.f32.gmra.mxu1 %vm1289_vm8, %v1600_v53  ;;  %v2183_v54 = vrot.slane %v2169_v61, %v5156_v8  ;;  %v1643_v62 = vrot.slane %v1635_v41, %v5156_v8  ;;  %v1650_v34 = vrot.slane %v1636_v36, %v5156_v8  ;;  %v2185_v49 = vcombine.low %v5429_v30, %v6847_v50  ;;  %v6862_v61 = vld [vmem:[#allocation19_spill] sm:$0xff] }
  0x9b   : > { %4834 = vmatprep.mubr.msk.f32.mxu1 %vm1289_vm8, %v1617_v9  ;;  %4866 = vmatprep.mubr.msk.f32.mxu0 %vm1289_vm8, %v2167_v15  ;;  %v1660_v59 = vrot.slane %v1652_v22, %v5156_v8  ;;  %v1667_v12 = vrot.slane %v1653_v51, %v5156_v8  ;;  %v4612_v44 = vcombine.high %v6847_v50, %v6846_v33  ;;  %v6863_v36 = vld [vmem:[#allocation23_spill] sm:$0xff]  ;;  %v6865_v22 = vld [vmem:[#allocation25_spill] sm:$0xff]  ;;  %v6867_v51 = vld [vmem:[#allocation26_spill] sm:$0xff] }
  0x9c   : > { %v2184_v56 = vcombine.low %v2176_v16, %v2183_v54  ;;  %v1651_v31 = vcombine.low %v1643_v62, %v1650_v34  ;;  %v2193_v6 = vrot.slane %v2185_v49, %v5156_v8  ;;  %v2202_v0 = vcombine.low %v6848_v29, %v6851_v48  ;;  %v6868_v54 = vld [vmem:[#allocation24_spill] sm:$0xff] }
  0x9d   : > { %v1668_v25 = vcombine.low %v1660_v59, %v1667_v12  ;;  %v2200_v30 = vrot.slane %v4612_v44, %v5156_v8  ;;  %v2203_v38 = vcombine.low %v6850_v23, %v6852_v19  ;;  %v1669_v10 = vcombine.low %v6854_v13, %v6853_v3  ;;  %v6866_v23 = vld [vmem:[#allocation22_spill] sm:$0xff]  ;;  %v6869_v59 = vld [vmem:[#allocation21_spill] sm:$0xff] }
  0x9e   : > { %4835 = vmatmul.mubr.msk.f32.gmra.mxu1 %vm1289_vm8, %v1634_v21  ;;  %4867 = vmatmul.mubr.msk.f32.gmra.mxu0 %vm1289_vm8, %v2184_v56  ;;  %v2210_v55 = vrot.slane %v2202_v0, %v5156_v8  ;;  %v1670_v57 = vcombine.low %v6856_v17, %v6855_v28  ;;  %v1686_v40 = vcombine.low %v6858_v37, %v6857_v5  ;;  %v6864_v21 = vld [vmem:[#allocation20_spill] sm:$0xff]  ;;  %v6870_v13 = vld [vmem:[#allocation30_spill] sm:$0xff] }
  0x9f   : > { %4837 = vmatprep.mubr.msk.f32.mxu1 %vm1289_vm8, %v1651_v31  ;;  %v2201_v53 = vcombine.low %v2193_v6, %v2200_v30  ;;  %v2217_v4 = vrot.slane %v2203_v38, %v5156_v8  ;;  %v1677_v20 = vrot.slane %v1669_v10, %v5156_v8  ;;  %v1687_v14 = vcombine.low %v6860_v7, %v6859_v32  ;;  %v6871_v10 = vld [vmem:[#allocation27_spill] sm:$0xff] }
  0xa0   : > { %v1684_v39 = vrot.slane %v1670_v57, %v5156_v8  ;;  %v1694_v11 = vrot.slane %v1686_v40, %v5156_v8  ;;  %v2219_v18 = vcombine.low %v6853_v3, %v6856_v17  ;;  %v2220_v24 = vcombine.low %v6855_v28, %v6858_v37  ;;  %v6872_v28 = vld [vmem:[#allocation28_spill] sm:$0xff]  ;;  %v6874_v40 = vld [vmem:[#allocation35_spill] sm:$0xff] }
  0xa1   : > { %4869 = vmatprep.mubr.msk.f32.mxu0 %vm1289_vm8, %v2201_v53  ;;  %v2218_v47 = vcombine.low %v2210_v55, %v2217_v4  ;;  %v1701_v63 = vrot.slane %v1687_v14, %v5156_v8  ;;  %v4613_v27 = vcombine.high %v6858_v37, %v6857_v5  ;;  %v2237_v9 = vcombine.low %v6859_v32, %v6861_v35  ;;  %v6873_v17 = vld [vmem:[#allocation32_spill] sm:$0xff]  ;;  %v6875_v53 = vld [vmem:[#allocation31_spill] sm:$0xff]  ;;  %v6877_v32 = vld [vmem:[#allocation34_spill] sm:$0xff] }
  0xa2   : > { %4838 = vmatmul.mubr.msk.f32.gmra.mxu1 %vm1289_vm8, %v1668_v25  ;;  %v1685_v46 = vcombine.low %v1677_v20, %v1684_v39  ;;  %v2227_v60 = vrot.slane %v2219_v18, %v5156_v8  ;;  %v2234_v45 = vrot.slane %v2220_v24, %v5156_v8  ;;  %v1703_v16 = vcombine.low %v6861_v35, %v6862_v61  ;;  %v6876_v20 = vld [vmem:[#allocation36_spill] sm:$0xff]  ;;  %v6878_v18 = vld [vmem:[#allocation29_spill] sm:$0xff] }
  0xa3   : > { %4870 = vmatmul.mubr.msk.f32.gmra.mxu0 %vm1289_vm8, %v2218_v47  ;;  %v1702_v41 = vcombine.low %v1694_v11, %v1701_v63  ;;  %v2244_v33 = vrot.slane %v4613_v27, %v5156_v8  ;;  %v2251_v50 = vrot.slane %v2237_v9, %v5156_v8  ;;  %v1704_v15 = vcombine.low %v6864_v21, %v6863_v36  ;;  %v6882_v21 = vld [vmem:[#allocation39_spill] sm:$0xff] }
  0xa4   : > { %4840 = vmatprep.mubr.msk.f32.mxu1 %vm1289_vm8, %v1685_v46  ;;  %v2235_v29 = vcombine.low %v2227_v60, %v2234_v45  ;;  %v1711_v1 = vrot.slane %v1703_v16, %v5156_v8  ;;  %v1720_v48 = vcombine.low %v6866_v23, %v6865_v22  ;;  %v1721_v62 = vcombine.low %v6868_v54, %v6867_v51  ;;  %v6879_v45 = vld [vmem:[#allocation33_spill] sm:$0xff] }
  0xa5   : > { %v2252_v34 = vcombine.low %v2244_v33, %v2251_v50  ;;  %v1718_v49 = vrot.slane %v1704_v15, %v5156_v8  ;;  %v2253_v12 = vcombine.low %v6862_v61, %v6869_v59  ;;  %v2254_v44 = vcombine.low %v6863_v36, %v6866_v23  ;;  %v6880_v33 = vld [vmem:[#allocation37_spill] sm:$0xff]  ;;  %v6881_v36 = vld [vmem:[#allocation38_spill] sm:$0xff]  ;;  %v6884_v23 = vld [vmem:[#allocation40_spill] sm:$0xff] }
  0xa6   : > { %4841 = vmatmul.mubr.msk.f32.gmra.mxu1 %vm1289_vm8, %v1702_v41  ;;  %4872 = vmatprep.mubr.msk.f32.mxu0 %vm1289_vm8, %v2235_v29  ;;  %v1728_v56 = vrot.slane %v1720_v48, %v5156_v8  ;;  %v1735_v31 = vrot.slane %v1721_v62, %v5156_v8  ;;  %v2270_v6 = vcombine.low %v6865_v22, %v6868_v54  ;;  %v6883_v22 = vld [vmem:[#allocation41_spill] sm:$0xff] }
  0xa7   : > { %4873 = vmatmul.mubr.msk.f32.gmra.mxu0 %vm1289_vm8, %v2252_v34  ;;  %v1719_v0 = vcombine.low %v1711_v1, %v1718_v49  ;;  %v2261_v25 = vrot.slane %v2253_v12, %v5156_v8  ;;  %v2268_v30 = vrot.slane %v2254_v44, %v5156_v8  ;;  %v4614_v19 = vcombine.high %v6868_v54, %v6867_v51  ;;  %v6885_v51 = vld [vmem:[#allocation45_spill] sm:$0xff]  ;;  %v6886_v54 = vld [vmem:[#allocation42_spill] sm:$0xff] }
  0xa8   : > { %v1736_v38 = vcombine.low %v1728_v56, %v1735_v31  ;;  %v2278_v3 = vrot.slane %v2270_v6, %v5156_v8  ;;  %v1737_v55 = vcombine.low %v6871_v10, %v6870_v13  ;;  %v1738_v57 = vcombine.low %v6873_v17, %v6872_v28  ;;  %v6887_v6 = vld [vmem:[#allocation44_spill] sm:$0xff] }
  0xa9   : > { %4843 = vmatprep.mubr.msk.f32.mxu1 %vm1289_vm8, %v1719_v0  ;;  %v2269_v5 = vcombine.low %v2261_v25, %v2268_v30  ;;  %v2285_v37 = vrot.slane %v4614_v19, %v5156_v8  ;;  %v1754_v4 = vcombine.low %v6875_v53, %v6874_v40  ;;  %v1755_v7 = vcombine.low %v6877_v32, %v6876_v20 }
  0xaa   : > { %4844 = vmatmul.mubr.msk.f32.gmra.mxu1 %vm1289_vm8, %v1736_v38  ;;  %v1745_v14 = vrot.slane %v1737_v55, %v5156_v8  ;;  %v1752_v39 = vrot.slane %v1738_v57, %v5156_v8  ;;  %v2287_v11 = vcombine.low %v6870_v13, %v6873_v17  ;;  %v2288_v24 = vcombine.low %v6872_v28, %v6878_v18  ;;  %v6888_v38 = vld [vmem:[#allocation43_spill] sm:$0xff]  ;;  %v6890_v17 = vld [vmem:[#allocation46_spill] sm:$0xff] }
  0xab   : > { %4875 = vmatprep.mubr.msk.f32.mxu0 %vm1289_vm8, %v2269_v5  ;;  %v2286_v47 = vcombine.low %v2278_v3, %v2285_v37  ;;  %v1762_v63 = vrot.slane %v1754_v4, %v5156_v8  ;;  %v1769_v27 = vrot.slane %v1755_v7, %v5156_v8  ;;  %v2304_v35 = vcombine.low %v6874_v40, %v6877_v32  ;;  %v6889_v55 = vld [vmem:[#allocation47_spill] sm:$0xff] }
  0xac   : > { %v1753_v9 = vcombine.low %v1745_v14, %v1752_v39  ;;  %v2295_v46 = vrot.slane %v2287_v11, %v5156_v8  ;;  %v2302_v60 = vrot.slane %v2288_v24, %v5156_v8  ;;  %v2305_v61 = vcombine.low %v6876_v20, %v6879_v45 }
  0xad   : > { %4876 = vmatmul.mubr.msk.f32.gmra.mxu0 %vm1289_vm8, %v2286_v47  ;;  %v1770_v16 = vcombine.low %v1762_v63, %v1769_v27  ;;  %v2312_v41 = vrot.slane %v2304_v35, %v5156_v8  ;;  %v1771_v50 = vcombine.low %v6879_v45, %v6880_v33  ;;  %v1772_v15 = vcombine.low %v6882_v21, %v6881_v36 }
  0xae   : > { %4846 = vmatprep.mubr.msk.f32.mxu1 %vm1289_vm8, %v1753_v9  ;;  %v2303_v29 = vcombine.low %v2295_v46, %v2302_v60  ;;  %v2319_v1 = vrot.slane %v2305_v61, %v5156_v8  ;;  %v1788_v48 = vcombine.low %v6884_v23, %v6883_v22  ;;  %v1789_v62 = vcombine.low %v6886_v54, %v6885_v51  ;;  %v2985_v54 = vld [vmem:[%s6714_s3 + $0x8] sm:$0xff] }
  0xaf   : > { %4847 = vmatmul.mubr.msk.f32.gmra.mxu1 %vm1289_vm8, %v1770_v16  ;;  %v1779_v34 = vrot.slane %v1771_v50, %v5156_v8  ;;  %v1786_v49 = vrot.slane %v1772_v15, %v5156_v8  ;;  %v4615_v59 = vcombine.high %v6879_v45, %v6880_v33  ;;  %v2322_v12 = vcombine.low %v6881_v36, %v6884_v23 }
  0xb0   : > { %4878 = vmatprep.mubr.msk.f32.mxu0 %vm1289_vm8, %v2303_v29  ;;  %v2320_v44 = vcombine.low %v2312_v41, %v2319_v1  ;;  %v1796_v56 = vrot.slane %v1788_v48, %v5156_v8  ;;  %v1803_v31 = vrot.slane %v1789_v62, %v5156_v8  ;;  %v2338_v0 = vcombine.low %v6883_v22, %v6887_v6 }
  0xb1   : > { %v1787_v25 = vcombine.low %v1779_v34, %v1786_v49  ;;  %v2329_v30 = vrot.slane %v4615_v59, %v5156_v8  ;;  %v2336_v19 = vrot.slane %v2322_v12, %v5156_v8  ;;  %v2339_v3 = vcombine.low %v6885_v51, %v6888_v38  ;;  %4887 = vmatprep.subr.mxu1 %v2985_v54 }
  0xb2   : > { %4879 = vmatmul.mubr.msk.f32.gmra.mxu0 %vm1289_vm8, %v2320_v44  ;;  %v1804_v13 = vcombine.low %v1796_v56, %v1803_v31  ;;  %v2346_v10 = vrot.slane %v2338_v0, %v5156_v8  ;;  %v1805_v28 = vcombine.low %v6888_v38, %v6889_v55  ;;  %v1806_v57 = vcombine.low %v6890_v17, %v5752_v42  ;;  %v6130_v44 = vld [vmem:[%s6713_s2] ss:$0 sm:$0xff] }
  0xb3   : > { %4849 = vmatprep.mubr.msk.f32.mxu1 %vm1289_vm8, %v1787_v25  ;;  %v2337_v5 = vcombine.low %v2329_v30, %v2336_v19  ;;  %v2353_v37 = vrot.slane %v2339_v3, %v5156_v8  ;;  %v1822_v40 = vcombine.low %v5763_v43, %v5793_v2  ;;  %v1823_v53 = vcombine.low %v5799_v26, %v5770_v52 }
  0xb4   : > { %4850 = vmatmul.mubr.msk.f32.gmra.mxu1 %vm1289_vm8, %v1804_v13  ;;  %v1813_v4 = vrot.slane %v1805_v28, %v5156_v8  ;;  %v1820_v20 = vrot.slane %v1806_v57, %v5156_v8  ;;  %v2355_v32 = vcombine.low %v6889_v55, %v6890_v17  ;;  %v4616_v7 = vcombine.high %v6890_v17, %v5752_v42 }
  0xb5   : > { %4881 = vmatprep.mubr.msk.f32.mxu0 %vm1289_vm8, %v2337_v5  ;;  %v2354_v14 = vcombine.low %v2346_v10, %v2353_v37  ;;  %v1830_v43 = vrot.slane %v1822_v40, %v5156_v8  ;;  %v1837_v39 = vrot.slane %v1823_v53, %v5156_v8  ;;  %v2372_v11 = vcombine.low %v5793_v2, %v5799_v26 }
  0xb6   : > { %v1821_v18 = vcombine.low %v1813_v4, %v1820_v20  ;;  %v2363_v24 = vrot.slane %v2355_v32, %v5156_v8  ;;  %v2370_v47 = vrot.slane %v4616_v7, %v5156_v8  ;;  %v2373_v63 = vcombine.low %v5770_v52, %v5782_v58  ;;  %4888 = vmatpush3.msra.mxu1 %v2985_v54 }
  0xb7   : > { %4882 = vmatmul.mubr.msk.f32.gmra.mxu0 %vm1289_vm8, %v2354_v14  ;;  %v1838_v42 = vcombine.low %v1830_v43, %v1837_v39  ;;  %v2380_v27 = vrot.slane %v2372_v11, %v5156_v8 }
  0xb8   : > { %4852 = vmatprep.mubr.msk.f32.mxu1 %vm1289_vm8, %v1821_v18  ;;  %v2371_v35 = vcombine.low %v2363_v24, %v2370_v47  ;;  %v2387_v9 = vrot.slane %v2373_v63, %v5156_v8 }
  0xb9   : > { %4853 = vmatmul.mubr.msk.f32.gmra.mxu1 %vm1289_vm8, %v1838_v42 }
  0xba   : > { %4884 = vmatprep.mubr.msk.f32.mxu0 %vm1289_vm8, %v2371_v35  ;;  %v2388_v2 = vcombine.low %v2380_v27, %v2387_v9 }
  0xbc   : > { %4885 = vmatmul.mubr.msk.f32.gmra.mxu0 %vm1289_vm8, %v2388_v2 }
  0xe9   : > { %v4795_v26 = vpop.f32.mrf.mxu1 }
  0xeb   : > { %v1400_v46 = vpop.f32.mrf.mxu1 }
  0xf3   : > { %v4798_v52 = vpop.f32.mrf.mxu1 }
  0xf5   : > { %v1410_v58 = vpop.f32.mrf.mxu1 }
  0xff   : > { %v4801_v60 = vpop.f32.mrf.mxu1 }
 0x101   : > { %v1420_v45 = vpop.f32.mrf.mxu1 }
 0x10a   : > { %v4804_v61 = vpop.f32.mrf.mxu1 }
 0x10c   : > { %v6098_v16 = vpop.f32.mrf.mxu1 }
 0x117   : > { %v6100_v41 = vpop.f32.mrf.mxu1 }
 0x119   : > { %v6102_v33 = vpop.f32.mrf.mxu1 }
 0x11f   : > { %v6104_v50 = vpop.f32.mrf.mxu1 }
 0x121   : > { %v6106_v36 = vpop.f32.mrf.mxu1 }
 0x12a   : > { %v6108_v21 = vpop.f32.mrf.mxu1 }
 0x12c   : > { %v6110_v15 = vpop.f32.mrf.mxu1 }
 0x137   : > { %v6112_v29 = vpop.f32.mrf.mxu1 }
 0x139   : > { %v6114_v1 = vpop.f32.mrf.mxu1 }
 0x142   : > { %v6116_v22 = vpop.f32.mrf.mxu1 }
 0x144   : > { %v6118_v23 = vpop.f32.mrf.mxu1 }
 0x14d   : > { %v4859_v48 = vpop.f32.mrf.mxu0 }
 0x14e   : > { %v6120_v51 = vpop.f32.mrf.mxu1 }
 0x14f   : > { %v2498_v34 = vpop.f32.mrf.mxu0 }
 0x150   : > { %v6125_v62 = vpop.f32.mrf.mxu1 }
 0x152   : > { %v4827_v49 = vpop.f32.mrf.mxu1 }
 0x153   : > { %v1954_v59 = vadd.f32 %v4827_v49, %v4795_v26  ;;  %v4862_v12 = vpop.f32.mrf.mxu0 }
 0x154   : > { %v1948_v56 = vpop.f32.mrf.mxu1 }
 0x155   : > { %v2598_v31 = vadd.f32 %v4859_v48, %v1954_v59  ;;  %v1949_v6 = vadd.f32 %v1948_v56, %v1400_v46  ;;  %v2508_v0 = vpop.f32.mrf.mxu0 }
 0x156   : > { %v4830_v25 = vpop.f32.mrf.mxu1 }
 0x157   : > { %v6133_v30 = vadd.f32 %v6130_v44, %v2598_v31  ;;  %v2597_v19 = vadd.f32 %v2498_v34, %v1949_v6  ;;  %v1964_v38 = vadd.f32 %v4830_v25, %v4798_v52 }
 0x158   : > { %v1958_v3 = vpop.f32.mrf.mxu1  ;;  %v4865_v13 = vpop.f32.mrf.mxu0 }
 0x159   : > { %v4640_v10 = vmul.f32 -1.442695, %v6133_v30  ;;  %v6137_v55 = vadd.f32 %v6130_v44, %v2597_v19  ;;  %v1959_v28 = vadd.f32 %v1958_v3, %v1410_v58  ;;  %v2600_v17 = vadd.f32 %v4862_v12, %v1964_v38  ;;  %2886 = vrot.lane.b32.xlu1 %v6133_v30, %s5070_s17 }
 0x15a   : > { %v4833_v57 = vpop.f32.mrf.mxu1  ;;  %v2518_v5 = vpop.f32.mrf.mxu0 }
 0x15b   : > { %4965 = vpow2.f32 %v4640_v10  ;;  %v4639_v37 = vmul.f32 -1.442695, %v6137_v55  ;;  %v6143_v40 = vadd.f32 %v6130_v44, %v2600_v17  ;;  %v1974_v53 = vadd.f32 %v4833_v57, %v4801_v60 }
 0x15c   : > { %v2599_v4 = vadd.f32 %v2508_v0, %v1959_v28  ;;  %v1968_v20 = vpop.f32.mrf.mxu1 }
 0x15d   : > { %4967 = vpow2.f32 %v4639_v37  ;;  %v4642_v32 = vmul.f32 -1.442695, %v6143_v40  ;;  %v1969_v7 = vadd.f32 %v1968_v20, %v1420_v45  ;;  %v2602_v14 = vadd.f32 %v4865_v13, %v1974_v53  ;;  %2884 = vrot.lane.b32.xlu1 %v6137_v55, %s5070_s17 }
 0x15e   : > { %v6149_v43 = vadd.f32 %v6130_v44, %v2599_v4  ;;  %v4836_v39 = vpop.f32.mrf.mxu1  ;;  %v4868_v11 = vpop.f32.mrf.mxu0 }
 0x15f   : > { %4969 = vpow2.f32 %v4642_v32  ;;  %v6152_v18 = vadd.f32 %v6130_v44, %v2602_v14  ;;  %v1984_v24 = vadd.f32 %v4836_v39, %v4804_v61  ;;  %v2601_v47 = vadd.f32 %v2518_v5, %v1969_v7  ;;  %v2984_v61 = vld [vmem:[%s6714_s3] sm:$0xff] }
 0x160   : > { %v4641_v63 = vmul.f32 -1.442695, %v6149_v43  ;;  %2888 = vrot.lane.b32.xlu0 %v6149_v43, %s5070_s17  ;;  %v1978_v42 = vpop.f32.mrf.mxu1  ;;  %v2528_v27 = vpop.f32.mrf.mxu0  ;;  %4889 = vmatprep.subr.mxu1 %v2984_v61 }
 0x161   : > { %v4644_v35 = vmul.f32 -1.442695, %v6152_v18  ;;  %v6159_v9 = vadd.f32 %v6130_v44, %v2601_v47  ;;  %v1979_v2 = vadd.f32 %v1978_v42, %v6098_v16  ;;  %v2604_v26 = vadd.f32 %v4868_v11, %v1984_v24  ;;  %2890 = vrot.lane.b32.xlu1 %v6143_v40, %s5070_s17  ;;  %4890 = vmatpush3.msra.mxu1 %v2984_v61 }
 0x162   : > { %4971 = vpow2.f32 %v4641_v63  ;;  %v4839_v46 = vpop.f32.mrf.mxu1 }
 0x163   : > { %4973 = vpow2.f32 %v4644_v35  ;;  %v4643_v52 = vmul.f32 -1.442695, %v6159_v9  ;;  %v6166_v58 = vadd.f32 %v6130_v44, %v2604_v26  ;;  %v1994_v60 = vadd.f32 %v4839_v46, %v6100_v41  ;;  %v4871_v45 = vpop.f32.mrf.mxu0 }
 0x164   : > { %v2603_v16 = vadd.f32 %v2528_v27, %v1979_v2  ;;  %2892 = vrot.lane.b32.xlu0 %v6159_v9, %s5070_s17  ;;  %v1988_v48 = vpop.f32.mrf.mxu1 }
 0x165   : > { %4975 = vpow2.f32 %v4643_v52  ;;  %v4646_v54 = vmul.f32 -1.442695, %v6166_v58  ;;  %v1989_v34 = vadd.f32 %v1988_v48, %v6102_v33  ;;  %v2606_v49 = vadd.f32 %v4871_v45, %v1994_v60  ;;  %2894 = vrot.lane.b32.xlu1 %v6152_v18, %s5070_s17  ;;  %v2538_v41 = vpop.f32.mrf.mxu0 }
 0x166   : > { %v6179_v59 = vadd.f32 %v6130_v44, %v2603_v16  ;;  %v4842_v12 = vpop.f32.mrf.mxu1 }
 0x167   : > { %4977 = vpow2.f32 %v4646_v54  ;;  %v6182_v56 = vadd.f32 %v6130_v44, %v2606_v49  ;;  %v2004_v31 = vadd.f32 %v4842_v12, %v6104_v50  ;;  %v2605_v6 = vadd.f32 %v2538_v41, %v1989_v34  ;;  %v4874_v0 = vpop.f32.mrf.mxu0 }
 0x168   : > { %v4966_v25 = vpop.eup %4965  ;;  %v4645_v33 = vmul.f32 -1.442695, %v6179_v59  ;;  %2896 = vrot.lane.b32.xlu0 %v6179_v59, %s5070_s17  ;;  %v1998_v19 = vpop.f32.mrf.mxu1 }
 0x169   : > { %v2705_v38 = vadd.f32 1.0, %v4966_v25  ;;  %v4648_v3 = vmul.f32 -1.442695, %v6182_v56  ;;  %v6190_v13 = vadd.f32 %v6130_v44, %v2605_v6  ;;  %v1999_v10 = vadd.f32 %v1998_v19, %v6106_v36  ;;  %2898 = vrot.lane.b32.xlu1 %v6166_v58, %s5070_s17  ;;  %v2548_v50 = vpop.f32.mrf.mxu0 }
 0x16a   : > { %v4968_v28 = vpop.eup %4967  ;;  %4979 = vpow2.f32 %v4645_v33  ;;  %v2608_v17 = vadd.f32 %v4874_v0, %v2004_v31  ;;  %v4845_v57 = vpop.f32.mrf.mxu1 }
 0x16b   : > { %4981 = vrcp.f32 %v2705_v38  ;;  %v2704_v5 = vadd.f32 1.0, %v4968_v28  ;;  %v4647_v37 = vmul.f32 -1.442695, %v6190_v13  ;;  %v2014_v53 = vadd.f32 %v4845_v57, %v6108_v21 }
 0x16c   : > { %v4970_v4 = vpop.eup %4969  ;;  %4983 = vpow2.f32 %v4648_v3  ;;  %v6198_v20 = vadd.f32 %v6130_v44, %v2608_v17  ;;  %v2607_v36 = vadd.f32 %v2548_v50, %v1999_v10  ;;  %2900 = vrot.lane.b32.xlu0 %v6190_v13, %s5070_s17  ;;  %v2008_v32 = vpop.f32.mrf.mxu1 }
 0x16d   : > { %4985 = vrcp.f32 %v2704_v5  ;;  %v2707_v7 = vadd.f32 1.0, %v4970_v4  ;;  %v2009_v14 = vadd.f32 %v2008_v32, %v6110_v15  ;;  %v4877_v39 = vpop.f32.mrf.mxu0  ;;  %2902 = vrot.lane.b32.xlu1 %v6182_v56, %s5070_s17 }
 0x16e   : > { %4987 = vpow2.f32 %v4647_v37  ;;  %v4650_v21 = vmul.f32 -1.442695, %v6198_v20  ;;  %v6207_v11 = vadd.f32 %v6130_v44, %v2607_v36  ;;  %v2610_v24 = vadd.f32 %v4877_v39, %v2014_v53 }
 0x16f   : > { %v4972_v47 = vpop.eup %4971  ;;  %4989 = vrcp.f32 %v2707_v7  ;;  %v4848_v63 = vpop.f32.mrf.mxu1 }
 0x170   : > { %v2558_v42 = vpop.f32.mrf.mxu0  ;;  %v4974_v27 = vpop.eup %4973  ;;  %v2706_v35 = vadd.f32 1.0, %v4972_v47  ;;  %4991 = vpow2.f32 %v4650_v21  ;;  %v4649_v15 = vmul.f32 -1.442695, %v6207_v11  ;;  %v6211_v2 = vadd.f32 %v6130_v44, %v2610_v24  ;;  %2904 = vrot.lane.b32.xlu0 %v6207_v11, %s5070_s17 }
 0x171   : > { %v2709_v26 = vadd.f32 1.0, %v4974_v27  ;;  %v2024_v46 = vadd.f32 %v4848_v63, %v6112_v29  ;;  %v2609_v52 = vadd.f32 %v2558_v42, %v2009_v14  ;;  %v2018_v60 = vpop.f32.mrf.mxu1  ;;  %2906 = vrot.lane.b32.xlu1 %v6198_v20, %s5070_s17 }
 0x172   : > { %v4976_v45 = vpop.eup %4975  ;;  %4993 = vrcp.f32 %v2706_v35  ;;  %v4652_v61 = vmul.f32 -1.442695, %v6211_v2  ;;  %v2019_v16 = vadd.f32 %v2018_v60, %v6114_v1  ;;  %v4880_v48 = vpop.f32.mrf.mxu0 }
 0x173   : > { %4995 = vrcp.f32 %v2709_v26  ;;  %v2708_v54 = vadd.f32 1.0, %v4976_v45  ;;  %v6221_v34 = vadd.f32 %v6130_v44, %v2609_v52  ;;  %v2612_v49 = vadd.f32 %v4880_v48, %v2024_v46 }
 0x174   : > { %v4978_v41 = vpop.eup %4977  ;;  %4997 = vpow2.f32 %v4649_v15  ;;  %v4851_v29 = vpop.f32.mrf.mxu1 }
 0x175   : > { %v2568_v12 = vpop.f32.mrf.mxu0  ;;  %4999 = vrcp.f32 %v2708_v54  ;;  %v2711_v31 = vadd.f32 1.0, %v4978_v41  ;;  %v4651_v6 = vmul.f32 -1.442695, %v6221_v34  ;;  %v6225_v0 = vadd.f32 %v6130_v44, %v2612_v49  ;;  %2908 = vrot.lane.b32.xlu0 %v6221_v34, %s5070_s17  ;;  %2910 = vrot.lane.b32.xlu1 %v6211_v2, %s5070_s17 }
 0x176   : > { %5001 = vpow2.f32 %v4652_v61  ;;  %v2034_v1 = vadd.f32 %v4851_v29, %v6116_v22  ;;  %v2611_v25 = vadd.f32 %v2568_v12, %v2019_v16  ;;  %v2028_v33 = vpop.f32.mrf.mxu1 }
 0x177   : > { %v4980_v19 = vpop.eup %4979  ;;  %5003 = vrcp.f32 %v2711_v31  ;;  %v4654_v38 = vmul.f32 -1.442695, %v6225_v0  ;;  %v2029_v3 = vadd.f32 %v2028_v33, %v6118_v23  ;;  %v4883_v10 = vpop.f32.mrf.mxu0 }
 0x178   : > { %v4982_v50 = vpop.eup %4981  ;;  %v2710_v28 = vadd.f32 1.0, %v4980_v19  ;;  %5005 = vpow2.f32 %v4651_v6  ;;  %v6235_v17 = vadd.f32 %v6130_v44, %v2611_v25  ;;  %v2614_v57 = vadd.f32 %v4883_v10, %v2034_v1 }
 0x179   : > { %v4984_v5 = vpop.eup %4983  ;;  %5007 = vpow2.f32 %v4654_v38  ;;  %v4854_v37 = vpop.f32.mrf.mxu1  ;;  %2786 = vrot.lane.b32.xlu0 %v4982_v50, %s5071_s24 }
 0x17a   : > { %v2578_v22 = vpop.f32.mrf.mxu0  ;;  %v4986_v53 = vpop.eup %4985  ;;  %v2713_v4 = vadd.f32 1.0, %v4984_v5  ;;  %v4653_v36 = vmul.f32 -1.442695, %v6235_v17  ;;  %v6240_v23 = vadd.f32 %v6130_v44, %v2614_v57  ;;  %5009 = vrcp.f32 %v2710_v28 }
 0x17b   : > { %v4988_v32 = vpop.eup %4987  ;;  %v2044_v7 = vadd.f32 %v4854_v37, %v6120_v51  ;;  %v2613_v14 = vadd.f32 %v2578_v22, %v2029_v3  ;;  %v2038_v39 = vpop.f32.mrf.mxu1 }
 0x17c   : > { %v4990_v21 = vpop.eup %4989  ;;  %5011 = vrcp.f32 %v2713_v4  ;;  %v2712_v24 = vadd.f32 1.0, %v4988_v32  ;;  %v2039_v47 = vadd.f32 %v2038_v39, %v6125_v62  ;;  %v4886_v63 = vpop.f32.mrf.mxu0  ;;  %v4656_v51 = vmul.f32 -1.442695, %v6240_v23 }
 0x17d   : > { %v4992_v42 = vpop.eup %4991  ;;  %5013 = vpow2.f32 %v4653_v36  ;;  %v6245_v27 = vadd.f32 %v6130_v44, %v2613_v14  ;;  %v2616_v35 = vadd.f32 %v4886_v63, %v2044_v7  ;;  %2790 = vrot.lane.b32.xlu1 %v4990_v21, %s5071_s24  ;;  %2784 = vrot.lane.b32.xlu0 %v4986_v53, %s5071_s24 }
 0x17e   : > { %v2715_v15 = vadd.f32 1.0, %v4992_v42  ;;  %v2588_v26 = vpop.f32.mrf.mxu0  ;;  %5015 = vrcp.f32 %v2712_v24 }
 0x17f   : > { %v4994_v46 = vpop.eup %4993  ;;  %v4655_v52 = vmul.f32 -1.442695, %v6245_v27  ;;  %v6252_v62 = vadd.f32 %v6130_v44, %v2616_v35  ;;  %v2615_v60 = vadd.f32 %v2588_v26, %v2039_v47 }
 0x180   : > { %v4996_v45 = vpop.eup %4995  ;;  %5017 = vrcp.f32 %v2715_v15 }
 0x181   : > { %v4998_v61 = vpop.eup %4997  ;;  %v4658_v16 = vmul.f32 -1.442695, %v6252_v62  ;;  %v6256_v48 = vadd.f32 %v6130_v44, %v2615_v60  ;;  %2794 = vrot.lane.b32.xlu1 %v4996_v45, %s5071_s24  ;;  %2788 = vrot.lane.b32.xlu0 %v4994_v46, %s5071_s24  ;;  %5019 = vpow2.f32 %v4656_v51 }
 0x182   : > { %v5000_v54 = vpop.eup %4999  ;;  %v2714_v49 = vadd.f32 1.0, %v4998_v61  ;;  %5021 = vpow2.f32 %v4655_v52 }
 0x183   : > { %v5002_v41 = vpop.eup %5001  ;;  %v4657_v29 = vmul.f32 -1.442695, %v6256_v48 }
 0x184   : > { %v5004_v12 = vpop.eup %5003  ;;  %5023 = vrcp.f32 %v2714_v49  ;;  %v2717_v31 = vadd.f32 1.0, %v5002_v41 }
 0x185   : > { %v5006_v6 = vpop.eup %5005  ;;  %5025 = vpow2.f32 %v4658_v16  ;;  %2798 = vrot.lane.b32.xlu1 %v5004_v12, %s5071_s24  ;;  %2792 = vrot.lane.b32.xlu0 %v5000_v54, %s5071_s24 }
 0x186   : > { %v5008_v44 = vpop.eup %5007  ;;  %5027 = vrcp.f32 %v2717_v31  ;;  %v2716_v1 = vadd.f32 1.0, %v5006_v6 }
 0x187   : > { %v2719_v25 = vadd.f32 1.0, %v5008_v44  ;;  %5029 = vpow2.f32 %v4657_v29  ;;  %v5010_v33 = vpop.eup %5009 }
 0x188   : > { %5031 = vrcp.f32 %v2716_v1 }
 0x189   : > { %v5012_v19 = vpop.eup %5011  ;;  %5033 = vrcp.f32 %v2719_v25  ;;  %2796 = vrot.lane.b32.xlu0 %v5010_v33, %s5071_s24 }
 0x18a   : > { %v5014_v38 = vpop.eup %5013  ;;  %2802 = vrot.lane.b32.xlu1 %v5012_v19, %s5071_s24 }
 0x18b   : > { %v2718_v3 = vadd.f32 1.0, %v5014_v38  ;;  %v5016_v10 = vpop.eup %5015 }
 0x18d   : > { %v5018_v50 = vpop.eup %5017  ;;  %5035 = vrcp.f32 %v2718_v3  ;;  %2800 = vrot.lane.b32.xlu0 %v5016_v10, %s5071_s24 }
 0x18e   : > { %2806 = vrot.lane.b32.xlu1 %v5018_v50, %s5071_s24  ;;  %v5020_v28 = vpop.eup %5019 }
 0x18f   : > { %v5022_v57 = vpop.eup %5021  ;;  %v2721_v22 = vadd.f32 1.0, %v5020_v28 }
 0x190   : > { %v2720_v32 = vadd.f32 1.0, %v5022_v57 }
 0x191   : > { %v5024_v5 = vpop.eup %5023  ;;  %5037 = vrcp.f32 %v2721_v22 }
 0x192   : > { %v5026_v37 = vpop.eup %5025  ;;  %2804 = vrot.lane.b32.xlu0 %v5024_v5, %s5071_s24  ;;  %5039 = vrcp.f32 %v2720_v32 }
 0x193   : > { %v5028_v53 = vpop.eup %5027  ;;  %v2723_v14 = vadd.f32 1.0, %v5026_v37 }
 0x194   : > { %v5030_v4 = vpop.eup %5029  ;;  %2810 = vrot.lane.b32.xlu1 %v5028_v53, %s5071_s24 }
 0x195   : > { %v5032_v36 = vpop.eup %5031  ;;  %v2722_v39 = vadd.f32 1.0, %v5030_v4  ;;  %5041 = vrcp.f32 %v2723_v14 }
 0x196   : > { %v5034_v7 = vpop.eup %5033  ;;  %2808 = vrot.lane.b32.xlu0 %v5032_v36, %s5071_s24 }
 0x197   : > { %5043 = vrcp.f32 %v2722_v39 }
 0x198   : > { %2814 = vrot.lane.b32.xlu1 %v5034_v7, %s5071_s24 }
 0x19a   : > { %v5036_v21 = vpop.eup %5035 }
 0x19b   : > { %2812 = vrot.lane.b32.xlu0 %v5036_v21, %s5071_s24 }
 0x19c   : > { %2914 = vrot.lane.b32.xlu1 %v6225_v0, %s5070_s17 }
 0x19e   : > { %v5038_v24 = vpop.eup %5037 }
 0x19f   : > { %2912 = vrot.lane.b32.xlu0 %v6235_v17, %s5070_s17  ;;  %v5040_v47 = vpop.eup %5039 }
 0x1a0   : > { %2918 = vrot.lane.b32.xlu1 %v6240_v23, %s5070_s17 }
 0x1a2   : > { %v5042_v63 = vpop.eup %5041 }
 0x1a3   : > { %2916 = vrot.lane.b32.xlu0 %v6245_v27, %s5070_s17 }
 0x1a4   : > { %2818 = vrot.lane.b32.xlu1 %v5038_v24, %s5071_s24  ;;  %v5044_v42 = vpop.eup %5043 }
 0x1a7   : > { %2816 = vrot.lane.b32.xlu0 %v5040_v47, %s5071_s24 }
 0x1a8   : > { %2822 = vrot.lane.b32.xlu1 %v5042_v63, %s5071_s24 }
 0x1ab   : > { %2820 = vrot.lane.b32.xlu0 %v5044_v42, %s5071_s24 }
 0x1ac   : > { %2922 = vrot.lane.b32.xlu1 %v6252_v62, %s5070_s17 }
 0x1af   : > { %2920 = vrot.lane.b32.xlu0 %v6256_v48, %s5070_s17 }
 0x1cb   : > { %v2887_v35 = vpop.permute.xlu1 %2886 }
 0x1cf   : > { %v2885_v15 = vpop.permute.xlu1 %2884 }
 0x1d2   : > { %v2889_v51 = vpop.permute.xlu0 %2888 }
 0x1d3   : > { %v2891_v26 = vpop.permute.xlu1 %2890 }
 0x1d6   : > { %v2893_v46 = vpop.permute.xlu0 %2892 }
 0x1d7   : > { %v2895_v52 = vpop.permute.xlu1 %2894 }
 0x1da   : > { %v2897_v60 = vpop.permute.xlu0 %2896 }
 0x1db   : > { %v2899_v45 = vpop.permute.xlu1 %2898 }
 0x1de   : > { %v2901_v61 = vpop.permute.xlu0 %2900 }
 0x1df   : > { %v2903_v16 = vpop.permute.xlu1 %2902 }
 0x1e2   : > { %v2905_v54 = vpop.permute.xlu0 %2904 }
 0x1e3   : > { %v2907_v49 = vpop.permute.xlu1 %2906 }
 0x1e7   : > { %v6288_v41 = vpop.permute.xlu0 %2908  ;;  %v6290_v29 = vpop.permute.xlu1 %2910 }
 0x1eb   : > { %v2787_v12 = vpop.permute.xlu0 %2786 }
 0x1ec   : > { %v2845_v31 = vadd.f32 %v2787_v12, %v6133_v30 }
 0x1ee   : > { %v2945_v25 = vadd.f32 %v2887_v35, %v2845_v31 }
 0x1ef   : > { %v2791_v6 = vpop.permute.xlu1 %2790  ;;  %v2785_v44 = vpop.permute.xlu0 %2784 }
 0x1f0   : > { %v2844_v1 = vadd.f32 %v2785_v44, %v6137_v55  ;;  %v2847_v33 = vadd.f32 %v2791_v6, %v6143_v40  ;;  %v2965_v28 = vmax.f32 %v2945_v25, 0.0 }
 0x1f2   : > { %v2944_v19 = vadd.f32 %v2885_v15, %v2844_v1  ;;  %v2947_v57 = vadd.f32 %v2891_v26, %v2847_v33 }
 0x1f3   : > { %v2795_v38 = vpop.permute.xlu1 %2794  ;;  %v2789_v3 = vpop.permute.xlu0 %2788 }
 0x1f4   : > { %v2964_v10 = vmax.f32 %v2944_v19, 0.0  ;;  %v2846_v50 = vadd.f32 %v2789_v3, %v6149_v43  ;;  %v2849_v5 = vadd.f32 %v2795_v38, %v6152_v18  ;;  %v2967_v53 = vmax.f32 %v2947_v57, 0.0 }
 0x1f6   : > { %v2946_v37 = vadd.f32 %v2889_v51, %v2846_v50  ;;  %4891 = vmatprep.mubr.msk.f32.mxu1 %vm2986_vm9, %v2964_v10  ;;  %v2949_v4 = vadd.f32 %v2895_v52, %v2849_v5 }
 0x1f7   : > { %v2799_v30 = vpop.permute.xlu1 %2798  ;;  %4892 = vmatmul.mubr.msk.f32.vlgmr.msra.gmra.mxu1 %vm2986_vm9, %v2965_v28  ;;  %v2793_v55 = vpop.permute.xlu0 %2792 }
 0x1f8   : > { %v2966_v22 = vmax.f32 %v2946_v37, 0.0  ;;  %v2848_v40 = vadd.f32 %v2793_v55, %v6159_v9  ;;  %v2851_v36 = vadd.f32 %v2799_v30, %v6166_v58  ;;  %v2969_v39 = vmax.f32 %v2949_v4, 0.0 }
 0x1fa   : > { %v2948_v32 = vadd.f32 %v2893_v46, %v2848_v40  ;;  %4894 = vmatprep.mubr.msk.f32.mxu1 %vm2986_vm9, %v2966_v22  ;;  %v2951_v21 = vadd.f32 %v2899_v45, %v2851_v36 }
 0x1fb   : > { %4895 = vmatmul.mubr.msk.f32.gmra.mxu1 %vm2986_vm9, %v2967_v53  ;;  %v2797_v43 = vpop.permute.xlu0 %2796 }
 0x1fc   : > { %v2968_v18 = vmax.f32 %v2948_v32, 0.0  ;;  %v2803_v7 = vpop.permute.xlu1 %2802  ;;  %v2850_v14 = vadd.f32 %v2797_v43, %v6179_v59  ;;  %v2971_v35 = vmax.f32 %v2951_v21, 0.0 }
 0x1fd   : > { %v2853_v24 = vadd.f32 %v2803_v7, %v6182_v56 }
 0x1fe   : > { %v2950_v47 = vadd.f32 %v2897_v60, %v2850_v14  ;;  %4897 = vmatprep.mubr.msk.f32.mxu1 %vm2986_vm9, %v2968_v18 }
 0x1ff   : > { %4898 = vmatmul.mubr.msk.f32.gmra.mxu1 %vm2986_vm9, %v2969_v39  ;;  %v2801_v9 = vpop.permute.xlu0 %2800  ;;  %v2953_v15 = vadd.f32 %v2903_v16, %v2853_v24 }
 0x200   : > { %v2970_v58 = vmax.f32 %v2950_v47, 0.0  ;;  %v2807_v63 = vpop.permute.xlu1 %2806  ;;  %v2852_v42 = vadd.f32 %v2801_v9, %v6190_v13 }
 0x201   : > { %v2855_v51 = vadd.f32 %v2807_v63, %v6198_v20  ;;  %v2973_v46 = vmax.f32 %v2953_v15, 0.0 }
 0x202   : > { %v2952_v26 = vadd.f32 %v2901_v61, %v2852_v42  ;;  %4900 = vmatprep.mubr.msk.f32.mxu1 %vm2986_vm9, %v2970_v58 }
 0x203   : > { %4901 = vmatmul.mubr.msk.f32.gmra.mxu1 %vm2986_vm9, %v2971_v35  ;;  %v2955_v60 = vadd.f32 %v2907_v49, %v2855_v51 }
 0x204   : > { %v2972_v59 = vmax.f32 %v2952_v26, 0.0  ;;  %v2805_v56 = vpop.permute.xlu0 %2804 }
 0x205   : > { %v2854_v52 = vadd.f32 %v2805_v56, %v6207_v11  ;;  %v2975_v31 = vmax.f32 %v2955_v60, 0.0 }
 0x206   : > { %v2811_v45 = vpop.permute.xlu1 %2810  ;;  %4903 = vmatprep.mubr.msk.f32.mxu1 %vm2986_vm9, %v2972_v59 }
 0x207   : > { %v2857_v13 = vadd.f32 %v2811_v45, %v6211_v2  ;;  %v2954_v12 = vadd.f32 %v2905_v54, %v2854_v52  ;;  %4904 = vmatmul.mubr.msk.f32.gmra.mxu1 %vm2986_vm9, %v2973_v46  ;;  %v3212_v45 = vld [vmem:[%s6715_s4] sm:$0xff] }
 0x208   : > { %v2809_v20 = vpop.permute.xlu0 %2808 }
 0x209   : > { %v2974_v61 = vmax.f32 %v2954_v12, 0.0  ;;  %v2856_v16 = vadd.f32 %v2809_v20, %v6221_v34  ;;  %v2957_v6 = vadd.f32 %v6290_v29, %v2857_v13  ;;  %v3215_v13 = vld [vmem:[%s6715_s4 + $0x18] sm:$0xff]  ;;  %v3214_v12 = vld [vmem:[%s6715_s4 + $0x10] sm:$0xff]  ;;  %v3217_v20 = vld [vmem:[%s6715_s4 + $0x28] sm:$0xff] }
 0x20a   : > { %v2815_v44 = vpop.permute.xlu1 %2814 }
 0x20b   : > { %v2956_v1 = vadd.f32 %v6288_v41, %v2856_v16  ;;  %4906 = vmatprep.mubr.msk.f32.mxu1 %vm2986_vm9, %v2974_v61  ;;  %v2977_v2 = vmax.f32 %v2957_v6, 0.0  ;;  %v2859_v25 = vadd.f32 %v2815_v44, %v6225_v0  ;;  %v3216_v61 = vld [vmem:[%s6715_s4 + $0x20] sm:$0xff]  ;;  %v3219_v16 = vld [vmem:[%s6715_s4 + $0x38] sm:$0xff]  ;;  %v3221_v6 = vld [vmem:[%s6715_s4 + $0x48] sm:$0xff] }
 0x20c   : > { %4907 = vmatmul.mubr.msk.f32.gmra.mxu1 %vm2986_vm9, %v2975_v31  ;;  %v3218_v31 = vld [vmem:[%s6715_s4 + $0x30] sm:$0xff]  ;;  %v3220_v44 = vld [vmem:[%s6715_s4 + $0x40] sm:$0xff] }
 0x20d   : > { %v2976_v11 = vmax.f32 %v2956_v1, 0.0  ;;  %v2813_v49 = vpop.permute.xlu0 %2812  ;;  %v3223_v1 = vld [vmem:[%s6715_s4 + $0x58] sm:$0xff] }
 0x20e   : > { %v2915_v54 = vpop.permute.xlu1 %2914  ;;  %v2858_v34 = vadd.f32 %v2813_v49, %v6235_v17  ;;  %v3225_v49 = vld [vmem:[%s6715_s4 + $0x68] sm:$0xff] }
 0x20f   : > { %4909 = vmatprep.mubr.msk.f32.mxu1 %vm2986_vm9, %v2976_v11  ;;  %v2959_v29 = vadd.f32 %v2915_v54, %v2859_v25  ;;  %v3222_v11 = vld [vmem:[%s6715_s4 + $0x50] sm:$0xff]  ;;  %v3227_v54 = vld [vmem:[%s6715_s4 + $0x78] sm:$0xff] }
 0x210   : > { %4910 = vmatmul.mubr.msk.f32.gmra.mxu1 %vm2986_vm9, %v2977_v2  ;;  %v3224_v2 = vld [vmem:[%s6715_s4 + $0x60] sm:$0xff]  ;;  %v3226_v25 = vld [vmem:[%s6715_s4 + $0x70] sm:$0xff] }
 0x211   : > { %v2913_v33 = vpop.permute.xlu0 %2912  ;;  %v2979_v3 = vmax.f32 %v2959_v29, 0.0  ;;  %v3228_v29 = vld [vmem:[%s6715_s4 + $0x80] sm:$0xff] }
 0x212   : > { %v2919_v19 = vpop.permute.xlu1 %2918  ;;  %v2958_v41 = vadd.f32 %v2913_v33, %v2858_v34  ;;  %v3229_v34 = vld [vmem:[%s6715_s4 + $0x88] sm:$0xff]  ;;  %v3231_v33 = vld [vmem:[%s6715_s4 + $0x98] sm:$0xff] }
 0x214   : > { %v2978_v38 = vmax.f32 %v2958_v41, 0.0  ;;  %v3233_v41 = vld [vmem:[%s6715_s4 + $0xa8] sm:$0xff] }
 0x215   : > { %v2917_v10 = vpop.permute.xlu0 %2916 }
 0x216   : > { %v2819_v50 = vpop.permute.xlu1 %2818  ;;  %4912 = vmatprep.mubr.msk.f32.mxu1 %vm2986_vm9, %v2978_v38  ;;  %v3232_v38 = vld [vmem:[%s6715_s4 + $0xa0] sm:$0xff] }
 0x217   : > { %v2861_v28 = vadd.f32 %v2819_v50, %v6240_v23  ;;  %4913 = vmatmul.mubr.msk.f32.gmra.mxu1 %vm2986_vm9, %v2979_v3  ;;  %v3235_v3 = vld [vmem:[%s6715_s4 + $0xb8] sm:$0xff]  ;;  %v3237_v50 = vld [vmem:[%s6715_s4 + $0xc8] sm:$0xff] }
 0x219   : > { %v2817_v0 = vpop.permute.xlu0 %2816  ;;  %v2961_v5 = vadd.f32 %v2919_v19, %v2861_v28  ;;  %v3230_v19 = vld [vmem:[%s6715_s4 + $0x90] sm:$0xff]  ;;  %v3236_v28 = vld [vmem:[%s6715_s4 + $0xc0] sm:$0xff] }
 0x21a   : > { %v2823_v57 = vpop.permute.xlu1 %2822  ;;  %v2860_v17 = vadd.f32 %v2817_v0, %v6245_v27  ;;  %v5072_v27 = vmov 0.0   ;;  %v3239_v0 = vld [vmem:[%s6715_s4 + $0xd8] sm:$0xff] }
 0x21b   : > { %v2981_v40 = vmax.f32 %v2961_v5, 0.0  ;;  %v2863_v53 = vadd.f32 %v2823_v57, %v6252_v62  ;;  %3313 = vmatprep.subr.mxu0 %v5072_v27  ;;  %v3213_v62 = vld [vmem:[%s6715_s4 + $0x8] sm:$0xff]  ;;  %v3238_v57 = vld [vmem:[%s6715_s4 + $0xd0] sm:$0xff]  ;;  %v3240_v5 = vld [vmem:[%s6715_s4 + $0xe0] sm:$0xff] }
 0x21c   : > { %v2960_v37 = vadd.f32 %v2917_v10, %v2860_v17  ;;  %4679 = vmatprep.mubr.msk.f32.mxu0 %vm3252_vm10, %v3213_v62  ;;  %v3234_v10 = vld [vmem:[%s6715_s4 + $0xb0] sm:$0xff]  ;;  %v3241_v17 = vld [vmem:[%s6715_s4 + $0xe8] sm:$0xff] }
 0x21d   : > { %v2821_v30 = vpop.permute.xlu0 %2820 }
 0x21e   : > { %v2980_v55 = vmax.f32 %v2960_v37, 0.0  ;;  %v2923_v22 = vpop.permute.xlu1 %2922  ;;  %v2862_v4 = vadd.f32 %v2821_v30, %v6256_v48  ;;  %v3243_v37 = vld [vmem:[%s6715_s4 + $0xf8] sm:$0xff]  ;;  %v3242_v30 = vld [vmem:[%s6715_s4 + $0xf0] sm:$0xff] }
 0x21f   : > { %v2963_v36 = vadd.f32 %v2923_v22, %v2863_v53  ;;  %v3244_v22 = vld [vmem:[%s6715_s4 + $0x100] sm:$0xff]  ;;  %v3246_v53 = vld [vmem:[%s6715_s4 + $0x110] sm:$0xff] }
 0x220   : > { %4915 = vmatprep.mubr.msk.f32.mxu1 %vm2986_vm9, %v2980_v55  ;;  %v3245_v55 = vld [vmem:[%s6715_s4 + $0x108] sm:$0xff] }
 0x221   : > { %4916 = vmatmul.mubr.msk.f32.gmra.mxu1 %vm2986_vm9, %v2981_v40  ;;  %v2921_v23 = vpop.permute.xlu0 %2920  ;;  %v2983_v18 = vmax.f32 %v2963_v36, 0.0  ;;  %v3247_v40 = vld [vmem:[%s6715_s4 + $0x118] sm:$0xff]  ;;  %v3248_v36 = vld [vmem:[%s6715_s4 + $0x120] sm:$0xff] }
 0x222   : > { %v2962_v32 = vadd.f32 %v2921_v23, %v2862_v4  ;;  %v3249_v4 = vld [vmem:[%s6715_s4 + $0x128] sm:$0xff]  ;;  %v3251_v23 = vld [vmem:[%s6715_s4 + $0x138] sm:$0xff] }
 0x224   : > { %v2982_v43 = vmax.f32 %v2962_v32, 0.0  ;;  %v3250_v32 = vld [vmem:[%s6715_s4 + $0x130] sm:$0xff] }
 0x226   : > { %4918 = vmatprep.mubr.msk.f32.mxu1 %vm2986_vm9, %v2982_v43 }
 0x227   : > { %4919 = vmatmul.mubr.msk.f32.gmra.mxu1 %vm2986_vm9, %v2983_v18 }
 0x2b7   : > { %v4893_v48 = vpop.f32.mrf.mxu1 }
 0x2b9   : > { %v3113_v7 = vpop.f32.mrf.mxu1 }
 0x2bb   : > { %v4896_v14 = vpop.f32.mrf.mxu1 }
 0x2bd   : > { %v3123_v39 = vpop.f32.mrf.mxu1 }
 0x2bf   : > { %v4899_v21 = vpop.f32.mrf.mxu1 }
 0x2c1   : > { %v3133_v24 = vpop.f32.mrf.mxu1 }
 0x2c3   : > { %v4902_v47 = vpop.f32.mrf.mxu1 }
 0x2c5   : > { %v3143_v9 = vpop.f32.mrf.mxu1 }
 0x2c7   : > { %v4905_v58 = vpop.f32.mrf.mxu1 }
 0x2c9   : > { %v3153_v63 = vpop.f32.mrf.mxu1 }
 0x2cc   : > { %v4908_v42 = vpop.f32.mrf.mxu1 }
 0x2ce   : > { %v3163_v35 = vpop.f32.mrf.mxu1 }
 0x2d0   : > { %v4911_v15 = vpop.f32.mrf.mxu1 }
 0x2d2   : > { %v3173_v51 = vpop.f32.mrf.mxu1 }
 0x2d7   : > { %v4914_v26 = vpop.f32.mrf.mxu1 }
 0x2d8   : > { %3314 = vmatpush1.msra.mxu0 %v4914_v26 }
 0x2d9   : > { %v3183_v59 = vpop.f32.mrf.mxu1  ;;  %3315 = vmatprep.subr.mxu0 %v5072_v27 }
 0x2da   : > { %3316 = vmatpush1.msra.mxu0 %v3183_v59 }
 0x2db   : > { %3317 = vmatprep.subr.mxu0 %v5072_v27 }
 0x2dc   : > { %3318 = vmatpush1.msra.mxu0 %v4911_v15 }
 0x2dd   : > { %3319 = vmatprep.subr.mxu0 %v5072_v27 }
 0x2de   : > { %3320 = vmatpush1.msra.mxu0 %v3173_v51 }
 0x2df   : > { %3321 = vmatprep.subr.mxu0 %v5072_v27 }
 0x2e0   : > { %3322 = vmatpush1.msra.mxu0 %v4908_v42 }
 0x2e1   : > { %3323 = vmatprep.subr.mxu0 %v5072_v27  ;;  %v4917_v56 = vpop.f32.mrf.mxu1 }
 0x2e2   : > { %3324 = vmatpush1.msra.mxu0 %v3163_v35 }
 0x2e3   : > { %3325 = vmatprep.subr.mxu0 %v5072_v27  ;;  %v3193_v46 = vpop.f32.mrf.mxu1 }
 0x2e4   : > { %3326 = vmatpush1.msra.mxu0 %v4905_v58 }
 0x2e5   : > { %3327 = vmatprep.subr.mxu0 %v5072_v27 }
 0x2e6   : > { %3328 = vmatpush1.msra.mxu0 %v3153_v63 }
 0x2e7   : > { %3329 = vmatprep.subr.mxu0 %v5072_v27  ;;  %v4920_v52 = vpop.f32.mrf.mxu1 }
 0x2e8   : > { %3330 = vmatpush1.msra.mxu0 %v4902_v47 }
 0x2e9   : > { %3331 = vmatprep.subr.mxu0 %v5072_v27  ;;  %v3203_v60 = vpop.f32.mrf.mxu1 }
 0x2ea   : > { %3332 = vmatpush1.msra.mxu0 %v3143_v9 }
 0x2eb   : > { %3333 = vmatprep.subr.mxu0 %v5072_v27 }
 0x2ec   : > { %3334 = vmatpush1.msra.mxu0 %v4899_v21 }
 0x2ed   : > { %3335 = vmatprep.subr.mxu0 %v5072_v27 }
 0x2ee   : > { %3336 = vmatpush1.msra.mxu0 %v3133_v24 }
 0x2ef   : > { %3337 = vmatprep.subr.mxu0 %v5072_v27 }
 0x2f0   : > { %3338 = vmatpush1.msra.mxu0 %v4896_v14 }
 0x2f1   : > { %3339 = vmatprep.subr.mxu0 %v5072_v27 }
 0x2f2   : > { %3340 = vmatpush1.msra.mxu0 %v3123_v39 }
 0x2f3   : > { %3341 = vmatprep.subr.mxu0 %v5072_v27 }
 0x2f4   : > { %3342 = vmatpush1.msra.mxu0 %v4893_v48 }
 0x2f5   : > { %3343 = vmatprep.subr.mxu0 %v5072_v27 }
 0x2f6   : > { %3344 = vmatpush1.msra.mxu0 %v3113_v7 }
 0x2f7   : > { %3369 = vmatprep.subr.mxu0 %v5072_v27 }
 0x2f8   : > { %3370 = vmatpush2.msra.mxu0 %v4920_v52 }
 0x2f9   : > { %3371 = vmatprep.subr.mxu0 %v5072_v27 }
 0x2fa   : > { %3372 = vmatpush2.msra.mxu0 %v3203_v60 }
 0x2fb   : > { %3373 = vmatprep.subr.mxu0 %v5072_v27 }
 0x2fc   : > { %3374 = vmatpush2.msra.mxu0 %v4917_v56 }
 0x2fd   : > { %3375 = vmatprep.subr.mxu0 %v5072_v27 }
 0x2fe   : > { %3376 = vmatpush2.msra.mxu0 %v3193_v46 }
 0x2ff   : > { %3378 = vmatmul.mubr.f32.vlgmr.msra.gmra.mxu0 %v3212_v45 }
 0x300   : > { %4680 = vmatprep.mubr.msk.f32.mxu0 %vm3252_vm10, %v3215_v13 }
 0x303   : > { %3383 = vmatmul.mubr.f32.gmra.mxu0 %v3214_v12 }
 0x304   : > { %4681 = vmatprep.mubr.msk.f32.mxu0 %vm3252_vm10, %v3217_v20 }
 0x307   : > { %3388 = vmatmul.mubr.f32.gmra.mxu0 %v3216_v61 }
 0x308   : > { %4682 = vmatprep.mubr.msk.f32.mxu0 %vm3252_vm10, %v3219_v16 }
 0x30b   : > { %3393 = vmatmul.mubr.f32.gmra.mxu0 %v3218_v31 }
 0x30c   : > { %4683 = vmatprep.mubr.msk.f32.mxu0 %vm3252_vm10, %v3221_v6 }
 0x30f   : > { %3398 = vmatmul.mubr.f32.gmra.mxu0 %v3220_v44 }
 0x310   : > { %4684 = vmatprep.mubr.msk.f32.mxu0 %vm3252_vm10, %v3223_v1 }
 0x313   : > { %3403 = vmatmul.mubr.f32.gmra.mxu0 %v3222_v11 }
 0x314   : > { %4685 = vmatprep.mubr.msk.f32.mxu0 %vm3252_vm10, %v3225_v49 }
 0x317   : > { %3408 = vmatmul.mubr.f32.gmra.mxu0 %v3224_v2 }
 0x318   : > { %4686 = vmatprep.mubr.msk.f32.mxu0 %vm3252_vm10, %v3227_v54 }
 0x31b   : > { %3413 = vmatmul.mubr.f32.gmra.mxu0 %v3226_v25 }
 0x31c   : > { %4687 = vmatprep.mubr.msk.f32.mxu0 %vm3252_vm10, %v3229_v34 }
 0x31f   : > { %3418 = vmatmul.mubr.f32.gmra.mxu0 %v3228_v29 }
 0x320   : > { %4688 = vmatprep.mubr.msk.f32.mxu0 %vm3252_vm10, %v3231_v33 }
 0x323   : > { %3423 = vmatmul.mubr.f32.gmra.mxu0 %v3230_v19 }
 0x324   : > { %4689 = vmatprep.mubr.msk.f32.mxu0 %vm3252_vm10, %v3233_v41 }
 0x327   : > { %3428 = vmatmul.mubr.f32.gmra.mxu0 %v3232_v38 }
 0x328   : > { %4690 = vmatprep.mubr.msk.f32.mxu0 %vm3252_vm10, %v3235_v3 }
 0x32b   : > { %3433 = vmatmul.mubr.f32.gmra.mxu0 %v3234_v10 }
 0x32c   : > { %4691 = vmatprep.mubr.msk.f32.mxu0 %vm3252_vm10, %v3237_v50 }
 0x32f   : > { %3438 = vmatmul.mubr.f32.gmra.mxu0 %v3236_v28 }
 0x330   : > { %4692 = vmatprep.mubr.msk.f32.mxu0 %vm3252_vm10, %v3239_v0 }
 0x333   : > { %3443 = vmatmul.mubr.f32.gmra.mxu0 %v3238_v57 }
 0x334   : > { %4693 = vmatprep.mubr.msk.f32.mxu0 %vm3252_vm10, %v3241_v17 }
 0x337   : > { %3448 = vmatmul.mubr.f32.gmra.mxu0 %v3240_v5 }
 0x338   : > { %4694 = vmatprep.mubr.msk.f32.mxu0 %vm3252_vm10, %v3243_v37 }
 0x33b   : > { %3453 = vmatmul.mubr.f32.gmra.mxu0 %v3242_v30 }
 0x33c   : > { %4695 = vmatprep.mubr.msk.f32.mxu0 %vm3252_vm10, %v3245_v55 }
 0x33f   : > { %3458 = vmatmul.mubr.f32.gmra.mxu0 %v3244_v22 }
 0x340   : > { %4696 = vmatprep.mubr.msk.f32.mxu0 %vm3252_vm10, %v3247_v40 }
 0x343   : > { %3463 = vmatmul.mubr.f32.gmra.mxu0 %v3246_v53 }
 0x344   : > { %4697 = vmatprep.mubr.msk.f32.mxu0 %vm3252_vm10, %v3249_v4 }
 0x347   : > { %3468 = vmatmul.mubr.f32.gmra.mxu0 %v3248_v36 }
 0x348   : > { %4698 = vmatprep.mubr.msk.f32.mxu0 %vm3252_vm10, %v3251_v23 }
 0x34b   : > { %3473 = vmatmul.mubr.f32.gmra.mxu0 %v3250_v32 }
 0x3bf   : > { %v3379_v43 = vpop.f32.mrf.mxu0 }
 0x3c0   : > { %v3478_v18 = vmax.f32 %v3379_v43, 0.0 }
 0x3c1   : > { %v3381_v27 = vpop.f32.mrf.mxu0 }
 0x3c2   : > { %v3518_v62 = vcombine.high %v3478_v18, %v3478_v18  ;;  %v3525_v48 = vrot.slane %v3478_v18, %v5156_v8 }
 0x3c3   : > { %v3384_v7 = vpop.f32.mrf.mxu0 }
 0x3c4   : > { %v3532_v14 = vrot.slane %v3518_v62, %v5156_v8  ;;  %v3533_v39 = vcombine.high %v3525_v48, %v3525_v48  ;;  %v3479_v21 = vmax.f32 %v3384_v7, 0.0 }
 0x3c5   : > { %v3386_v24 = vpop.f32.mrf.mxu0 }
 0x3c6   : > { %v3534_v47 = vcombine.high %v3532_v14, %v3532_v14  ;;  %v3858_v9 = vcombine.low %v3525_v48, %v3533_v39  ;;  %v3535_v58 = vcombine.high %v3479_v21, %v3479_v21  ;;  %v3542_v63 = vrot.slane %v3479_v21, %v5156_v8 }
 0x3c7   : > { %v3389_v42 = vpop.f32.mrf.mxu0 }
 0x3c8   : > { %v3859_v35 = vcombine.low %v3532_v14, %v3534_v47  ;;  %v3549_v15 = vrot.slane %v3535_v58, %v5156_v8  ;;  %v3550_v51 = vcombine.high %v3542_v63, %v3542_v63  ;;  %v3881_v26 = vrot.slane %v3542_v63, %v5156_v8 }
 0x3c9   : > { %v3480_v59 = vmax.f32 %v3389_v42, 0.0  ;;  %v3391_v56 = vpop.f32.mrf.mxu0  ;;  %v3866_v46 = vrot.slane %v3858_v9, %v5156_v8 }
 0x3ca   : > { %v3873_v52 = vrot.slane %v3859_v35, %v5156_v8  ;;  %v3551_v60 = vcombine.high %v3549_v15, %v3549_v15  ;;  %v3882_v45 = vcombine.low %v3550_v51, %v3549_v15  ;;  %4277 = vst.msk [vmem:[%s6482_s18 + $0x8] sm:$0x3] %vm4276_vm11, %v3881_v26 }
 0x3cb   : > { %v3552_v13 = vcombine.high %v3480_v59, %v3480_v59  ;;  %v3559_v12 = vrot.slane %v3480_v59, %v5156_v8  ;;  %v3394_v20 = vpop.f32.mrf.mxu0 }
 0x3cc   : > { %v3874_v61 = vcombine.low %v3866_v46, %v3873_v52  ;;  %v3481_v16 = vmax.f32 %v3394_v20, 0.0  ;;  %v3890_v2 = vrot.slane %v3882_v45, %v5156_v8 }
 0x3cd   : > { %v3566_v31 = vrot.slane %v3552_v13, %v5156_v8  ;;  %v3567_v6 = vcombine.high %v3559_v12, %v3559_v12  ;;  %v3883_v44 = vcombine.low %v3551_v60, %v3559_v12  ;;  %v3396_v1 = vpop.f32.mrf.mxu0 }
 0x3ce   : > { %4275 = vst.msk [vmem:[%s6482_s18] sm:$0xff] %vm4274_vm12, %v3874_v61  ;;  %v3569_v11 = vcombine.high %v3481_v16, %v3481_v16  ;;  %v3576_v49 = vrot.slane %v3481_v16, %v5156_v8 }
 0x3cf   : > { %v3568_v54 = vcombine.high %v3566_v31, %v3566_v31  ;;  %v3897_v25 = vrot.slane %v3883_v44, %v5156_v8  ;;  %v3905_v34 = vrot.slane %v3567_v6, %v5156_v8  ;;  %v3399_v29 = vpop.f32.mrf.mxu0 }
 0x3d0   : > { %v3583_v33 = vrot.slane %v3569_v11, %v5156_v8  ;;  %v3584_v19 = vcombine.high %v3576_v49, %v3576_v49  ;;  %v3482_v41 = vmax.f32 %v3399_v29, 0.0 }
 0x3d1   : > { %v3898_v38 = vcombine.low %v3890_v2, %v3897_v25  ;;  %v3906_v3 = vcombine.low %v3566_v31, %v3568_v54  ;;  %4279 = vst.msk [vmem:[%s6482_s18 + $0x18] sm:$0x3] %vm4276_vm11, %v3905_v34  ;;  %v3401_v10 = vpop.f32.mrf.mxu0 }
 0x3d2   : > { %v3907_v50 = vcombine.low %v3576_v49, %v3584_v19  ;;  %v3929_v28 = vrot.slane %v3583_v33, %v5156_v8  ;;  %v3585_v0 = vcombine.high %v3583_v33, %v3583_v33  ;;  %v3586_v57 = vcombine.high %v3482_v41, %v3482_v41 }
 0x3d3   : > { %4278 = vst.msk [vmem:[%s6482_s18 + $0x10] sm:$0xff] %vm4274_vm12, %v3898_v38  ;;  %v3593_v17 = vrot.slane %v3482_v41, %v5156_v8  ;;  %v3404_v5 = vpop.f32.mrf.mxu0  ;;  %v3914_v37 = vrot.slane %v3906_v3, %v5156_v8 }
 0x3d4   : > { %v3921_v30 = vrot.slane %v3907_v50, %v5156_v8  ;;  %4281 = vst.msk [vmem:[%s6482_s18 + $0x28] sm:$0x3] %vm4276_vm11, %v3929_v28  ;;  %v3600_v55 = vrot.slane %v3586_v57, %v5156_v8  ;;  %v3483_v22 = vmax.f32 %v3404_v5, 0.0 }
 0x3d5   : > { %v3601_v40 = vcombine.high %v3593_v17, %v3593_v17  ;;  %v3930_v53 = vcombine.low %v3585_v0, %v3593_v17  ;;  %v3406_v4 = vpop.f32.mrf.mxu0 }
 0x3d6   : > { %v3922_v36 = vcombine.low %v3914_v37, %v3921_v30  ;;  %v3602_v23 = vcombine.high %v3600_v55, %v3600_v55  ;;  %v3603_v32 = vcombine.high %v3483_v22, %v3483_v22  ;;  %v3610_v43 = vrot.slane %v3483_v22, %v5156_v8 }
 0x3d7   : > { %v3931_v18 = vcombine.low %v3601_v40, %v3600_v55  ;;  %v3409_v27 = vpop.f32.mrf.mxu0  ;;  %v3938_v39 = vrot.slane %v3930_v53, %v5156_v8 }
 0x3d8   : > { %4280 = vst.msk [vmem:[%s6482_s18 + $0x20] sm:$0xff] %vm4274_vm12, %v3922_v36  ;;  %v3953_v62 = vrot.slane %v3602_v23, %v5156_v8  ;;  %v3617_v48 = vrot.slane %v3603_v32, %v5156_v8  ;;  %v3618_v7 = vcombine.high %v3610_v43, %v3610_v43  ;;  %v3484_v14 = vmax.f32 %v3409_v27, 0.0 }
 0x3d9   : > { %v3945_v21 = vrot.slane %v3931_v18, %v5156_v8  ;;  %v3411_v24 = vpop.f32.mrf.mxu0 }
 0x3da   : > { %4283 = vst.msk [vmem:[%s6482_s18 + $0x38] sm:$0x3] %vm4276_vm11, %v3953_v62  ;;  %v3619_v47 = vcombine.high %v3617_v48, %v3617_v48  ;;  %v3954_v9 = vcombine.low %v3610_v43, %v3618_v7  ;;  %v3620_v58 = vcombine.high %v3484_v14, %v3484_v14  ;;  %v3627_v63 = vrot.slane %v3484_v14, %v5156_v8 }
 0x3db   : > { %v3946_v42 = vcombine.low %v3938_v39, %v3945_v21  ;;  %v3414_v35 = vpop.f32.mrf.mxu0 }
 0x3dc   : > { %v3955_v15 = vcombine.low %v3617_v48, %v3619_v47  ;;  %v3634_v51 = vrot.slane %v3620_v58, %v5156_v8  ;;  %v3635_v26 = vcombine.high %v3627_v63, %v3627_v63  ;;  %v3977_v59 = vrot.slane %v3627_v63, %v5156_v8 }
 0x3dd   : > { %4282 = vst.msk [vmem:[%s6482_s18 + $0x30] sm:$0xff] %vm4274_vm12, %v3946_v42  ;;  %v3485_v56 = vmax.f32 %v3414_v35, 0.0  ;;  %v3416_v46 = vpop.f32.mrf.mxu0  ;;  %v3962_v52 = vrot.slane %v3954_v9, %v5156_v8 }
 0x3de   : > { %v3969_v60 = vrot.slane %v3955_v15, %v5156_v8  ;;  %v3636_v45 = vcombine.high %v3634_v51, %v3634_v51  ;;  %v3978_v13 = vcombine.low %v3635_v26, %v3634_v51  ;;  %4285 = vst.msk [vmem:[%s6482_s18 + $0x48] sm:$0x3] %vm4276_vm11, %v3977_v59 }
 0x3df   : > { %v3637_v12 = vcombine.high %v3485_v56, %v3485_v56  ;;  %v3644_v20 = vrot.slane %v3485_v56, %v5156_v8  ;;  %v3419_v61 = vpop.f32.mrf.mxu0 }
 0x3e0   : > { %v3970_v16 = vcombine.low %v3962_v52, %v3969_v60  ;;  %v3486_v31 = vmax.f32 %v3419_v61, 0.0  ;;  %v3986_v54 = vrot.slane %v3978_v13, %v5156_v8 }
 0x3e1   : > { %v3651_v6 = vrot.slane %v3637_v12, %v5156_v8  ;;  %v3652_v44 = vcombine.high %v3644_v20, %v3644_v20  ;;  %v3979_v1 = vcombine.low %v3636_v45, %v3644_v20  ;;  %v3421_v11 = vpop.f32.mrf.mxu0 }
 0x3e2   : > { %4284 = vst.msk [vmem:[%s6482_s18 + $0x40] sm:$0xff] %vm4274_vm12, %v3970_v16  ;;  %v3654_v49 = vcombine.high %v3486_v31, %v3486_v31  ;;  %v3661_v2 = vrot.slane %v3486_v31, %v5156_v8 }
 0x3e3   : > { %v3653_v25 = vcombine.high %v3651_v6, %v3651_v6  ;;  %v3993_v34 = vrot.slane %v3979_v1, %v5156_v8  ;;  %v4001_v29 = vrot.slane %v3652_v44, %v5156_v8  ;;  %v3424_v33 = vpop.f32.mrf.mxu0 }
 0x3e4   : > { %v3668_v19 = vrot.slane %v3654_v49, %v5156_v8  ;;  %v3669_v41 = vcombine.high %v3661_v2, %v3661_v2  ;;  %v3487_v38 = vmax.f32 %v3424_v33, 0.0 }
 0x3e5   : > { %v3994_v3 = vcombine.low %v3986_v54, %v3993_v34  ;;  %v4002_v10 = vcombine.low %v3651_v6, %v3653_v25  ;;  %4287 = vst.msk [vmem:[%s6482_s18 + $0x58] sm:$0x3] %vm4276_vm11, %v4001_v29  ;;  %v3426_v50 = vpop.f32.mrf.mxu0 }
 0x3e6   : > { %v4003_v28 = vcombine.low %v3661_v2, %v3669_v41  ;;  %v4025_v0 = vrot.slane %v3668_v19, %v5156_v8  ;;  %v3670_v57 = vcombine.high %v3668_v19, %v3668_v19  ;;  %v3671_v17 = vcombine.high %v3487_v38, %v3487_v38 }
 0x3e7   : > { %4286 = vst.msk [vmem:[%s6482_s18 + $0x50] sm:$0xff] %vm4274_vm12, %v3994_v3  ;;  %v3678_v5 = vrot.slane %v3487_v38, %v5156_v8  ;;  %v3429_v37 = vpop.f32.mrf.mxu0  ;;  %v4010_v30 = vrot.slane %v4002_v10, %v5156_v8 }
 0x3e8   : > { %v4017_v55 = vrot.slane %v4003_v28, %v5156_v8  ;;  %4289 = vst.msk [vmem:[%s6482_s18 + $0x68] sm:$0x3] %vm4276_vm11, %v4025_v0  ;;  %v3685_v22 = vrot.slane %v3671_v17, %v5156_v8  ;;  %v3488_v40 = vmax.f32 %v3429_v37, 0.0 }
 0x3e9   : > { %v3686_v53 = vcombine.high %v3678_v5, %v3678_v5  ;;  %v4026_v4 = vcombine.low %v3670_v57, %v3678_v5  ;;  %v3431_v36 = vpop.f32.mrf.mxu0 }
 0x3ea   : > { %v4018_v23 = vcombine.low %v4010_v30, %v4017_v55  ;;  %v3687_v32 = vcombine.high %v3685_v22, %v3685_v22  ;;  %v3688_v43 = vcombine.high %v3488_v40, %v3488_v40  ;;  %v3695_v18 = vrot.slane %v3488_v40, %v5156_v8 }
 0x3eb   : > { %v4027_v27 = vcombine.low %v3686_v53, %v3685_v22  ;;  %v3434_v62 = vpop.f32.mrf.mxu0  ;;  %v4034_v21 = vrot.slane %v4026_v4, %v5156_v8 }
 0x3ec   : > { %4288 = vst.msk [vmem:[%s6482_s18 + $0x60] sm:$0xff] %vm4274_vm12, %v4018_v23  ;;  %v4049_v48 = vrot.slane %v3687_v32, %v5156_v8  ;;  %v3702_v7 = vrot.slane %v3688_v43, %v5156_v8  ;;  %v3703_v14 = vcombine.high %v3695_v18, %v3695_v18  ;;  %v3489_v39 = vmax.f32 %v3434_v62, 0.0 }
 0x3ed   : > { %v4041_v24 = vrot.slane %v4027_v27, %v5156_v8  ;;  %v3436_v47 = vpop.f32.mrf.mxu0 }
 0x3ee   : > { %4291 = vst.msk [vmem:[%s6482_s18 + $0x78] sm:$0x3] %vm4276_vm11, %v4049_v48  ;;  %v3704_v9 = vcombine.high %v3702_v7, %v3702_v7  ;;  %v4050_v58 = vcombine.low %v3695_v18, %v3703_v14  ;;  %v3705_v63 = vcombine.high %v3489_v39, %v3489_v39  ;;  %v3712_v42 = vrot.slane %v3489_v39, %v5156_v8 }
 0x3ef   : > { %v4042_v35 = vcombine.low %v4034_v21, %v4041_v24  ;;  %v3439_v15 = vpop.f32.mrf.mxu0 }
 0x3f0   : > { %v4051_v51 = vcombine.low %v3702_v7, %v3704_v9  ;;  %v3719_v26 = vrot.slane %v3705_v63, %v5156_v8  ;;  %v3720_v59 = vcombine.high %v3712_v42, %v3712_v42  ;;  %v4073_v56 = vrot.slane %v3712_v42, %v5156_v8 }
 0x3f1   : > { %4290 = vst.msk [vmem:[%s6482_s18 + $0x70] sm:$0xff] %vm4274_vm12, %v4042_v35  ;;  %v3490_v46 = vmax.f32 %v3439_v15, 0.0  ;;  %v3441_v52 = vpop.f32.mrf.mxu0  ;;  %v4058_v60 = vrot.slane %v4050_v58, %v5156_v8 }
 0x3f2   : > { %v4065_v45 = vrot.slane %v4051_v51, %v5156_v8  ;;  %v3721_v13 = vcombine.high %v3719_v26, %v3719_v26  ;;  %v4074_v12 = vcombine.low %v3720_v59, %v3719_v26  ;;  %4293 = vst.msk [vmem:[%s6482_s18 + $0x88] sm:$0x3] %vm4276_vm11, %v4073_v56 }
 0x3f3   : > { %v3722_v20 = vcombine.high %v3490_v46, %v3490_v46  ;;  %v3729_v61 = vrot.slane %v3490_v46, %v5156_v8  ;;  %v3444_v16 = vpop.f32.mrf.mxu0 }
 0x3f4   : > { %v4066_v31 = vcombine.low %v4058_v60, %v4065_v45  ;;  %v3491_v6 = vmax.f32 %v3444_v16, 0.0  ;;  %v4082_v25 = vrot.slane %v4074_v12, %v5156_v8 }
 0x3f5   : > { %v3736_v44 = vrot.slane %v3722_v20, %v5156_v8  ;;  %v3737_v1 = vcombine.high %v3729_v61, %v3729_v61  ;;  %v4075_v11 = vcombine.low %v3721_v13, %v3729_v61  ;;  %v3446_v49 = vpop.f32.mrf.mxu0 }
 0x3f6   : > { %4292 = vst.msk [vmem:[%s6482_s18 + $0x80] sm:$0xff] %vm4274_vm12, %v4066_v31  ;;  %v3739_v2 = vcombine.high %v3491_v6, %v3491_v6  ;;  %v3746_v54 = vrot.slane %v3491_v6, %v5156_v8 }
 0x3f7   : > { %v3738_v34 = vcombine.high %v3736_v44, %v3736_v44  ;;  %v4089_v29 = vrot.slane %v4075_v11, %v5156_v8  ;;  %v4097_v33 = vrot.slane %v3737_v1, %v5156_v8  ;;  %v3449_v19 = vpop.f32.mrf.mxu0 }
 0x3f8   : > { %v3753_v41 = vrot.slane %v3739_v2, %v5156_v8  ;;  %v3754_v38 = vcombine.high %v3746_v54, %v3746_v54  ;;  %v3492_v3 = vmax.f32 %v3449_v19, 0.0 }
 0x3f9   : > { %v4090_v10 = vcombine.low %v4082_v25, %v4089_v29  ;;  %v4098_v50 = vcombine.low %v3736_v44, %v3738_v34  ;;  %4295 = vst.msk [vmem:[%s6482_s18 + $0x98] sm:$0x3] %vm4276_vm11, %v4097_v33  ;;  %v3451_v28 = vpop.f32.mrf.mxu0 }
 0x3fa   : > { %v4099_v0 = vcombine.low %v3746_v54, %v3754_v38  ;;  %v4121_v57 = vrot.slane %v3753_v41, %v5156_v8  ;;  %v3755_v17 = vcombine.high %v3753_v41, %v3753_v41  ;;  %v3756_v5 = vcombine.high %v3492_v3, %v3492_v3 }
 0x3fb   : > { %4294 = vst.msk [vmem:[%s6482_s18 + $0x90] sm:$0xff] %vm4274_vm12, %v4090_v10  ;;  %v3763_v37 = vrot.slane %v3492_v3, %v5156_v8  ;;  %v3454_v30 = vpop.f32.mrf.mxu0  ;;  %v4106_v55 = vrot.slane %v4098_v50, %v5156_v8 }
 0x3fc   : > { %v4113_v22 = vrot.slane %v4099_v0, %v5156_v8  ;;  %4297 = vst.msk [vmem:[%s6482_s18 + $0xa8] sm:$0x3] %vm4276_vm11, %v4121_v57  ;;  %v3770_v40 = vrot.slane %v3756_v5, %v5156_v8  ;;  %v3493_v53 = vmax.f32 %v3454_v30, 0.0 }
 0x3fd   : > { %v3771_v4 = vcombine.high %v3763_v37, %v3763_v37  ;;  %v4122_v36 = vcombine.low %v3755_v17, %v3763_v37  ;;  %v3456_v23 = vpop.f32.mrf.mxu0 }
 0x3fe   : > { %v4114_v32 = vcombine.low %v4106_v55, %v4113_v22  ;;  %v3772_v43 = vcombine.high %v3770_v40, %v3770_v40  ;;  %v3773_v18 = vcombine.high %v3493_v53, %v3493_v53  ;;  %v3780_v27 = vrot.slane %v3493_v53, %v5156_v8 }
 0x3ff   : > { %v4123_v62 = vcombine.low %v3771_v4, %v3770_v40  ;;  %v3459_v48 = vpop.f32.mrf.mxu0  ;;  %v4130_v24 = vrot.slane %v4122_v36, %v5156_v8 }
 0x400   : > { %4296 = vst.msk [vmem:[%s6482_s18 + $0xa0] sm:$0xff] %vm4274_vm12, %v4114_v32  ;;  %v4145_v7 = vrot.slane %v3772_v43, %v5156_v8  ;;  %v3787_v14 = vrot.slane %v3773_v18, %v5156_v8  ;;  %v3788_v39 = vcombine.high %v3780_v27, %v3780_v27  ;;  %v3494_v21 = vmax.f32 %v3459_v48, 0.0  ;;  %v4410_v48 = vld [vmem:[%s6482_s18 + $0x8] sm:$0xff] (%p5128_p4) }
 0x401   : > { %v4137_v47 = vrot.slane %v4123_v62, %v5156_v8  ;;  %v3461_v9 = vpop.f32.mrf.mxu0  ;;  %4411 = vst [vmem:[%s6638_s11 + $0x8] sm:$0xff] (%p5128_p4), %v4410_v48 }
 0x402   : > { %4299 = vst.msk [vmem:[%s6482_s18 + $0xb8] sm:$0x3] %vm4276_vm11, %v4145_v7  ;;  %v3789_v58 = vcombine.high %v3787_v14, %v3787_v14  ;;  %v4146_v63 = vcombine.low %v3780_v27, %v3788_v39  ;;  %v3790_v42 = vcombine.high %v3494_v21, %v3494_v21  ;;  %v3797_v35 = vrot.slane %v3494_v21, %v5156_v8  ;;  %v4412_v7 = vld [vmem:[%s6482_s18 + $0x10] sm:$0xff] (%p5128_p4)  ;;  %v4416_v39 = vld [vmem:[%s6482_s18 + $0x20] sm:$0xff] (%p5128_p4)  ;;  %v4418_v21 = vld [vmem:[%s6482_s18 + $0x28] sm:$0xff] (%p5128_p4) }
 0x403   : > { %v4138_v15 = vcombine.low %v4130_v24, %v4137_v47  ;;  %v3464_v51 = vpop.f32.mrf.mxu0  ;;  %4413 = vst [vmem:[%s6638_s11 + $0x20] sm:$0xff] (%p5128_p4), %v4412_v7  ;;  %4417 = vst [vmem:[%s6638_s11 + $0x40] sm:$0xff] (%p5128_p4), %v4416_v39  ;;  %v4420_v24 = vld [vmem:[%s6482_s18 + $0x30] sm:$0xff] (%p5128_p4)  ;;  %v4422_v47 = vld [vmem:[%s6482_s18 + $0x38] sm:$0xff] (%p5128_p4) }
 0x404   : > { %v4147_v26 = vcombine.low %v3787_v14, %v3789_v58  ;;  %v3804_v59 = vrot.slane %v3790_v42, %v5156_v8  ;;  %v3805_v56 = vcombine.high %v3797_v35, %v3797_v35  ;;  %v4169_v46 = vrot.slane %v3797_v35, %v5156_v8  ;;  %v4414_v14 = vld [vmem:[%s6482_s18 + $0x18] sm:$0xff] (%p5128_p4)  ;;  %4419 = vst [vmem:[%s6638_s11 + $0x48] sm:$0xff] (%p5128_p4), %v4418_v21  ;;  %v4424_v9 = vld [vmem:[%s6482_s18 + $0x40] sm:$0xff] (%p5128_p4)  ;;  %v4426_v58 = vld [vmem:[%s6482_s18 + $0x48] sm:$0xff] (%p5128_p4) }
 0x405   : > { %4298 = vst.msk [vmem:[%s6482_s18 + $0xb0] sm:$0xff] %vm4274_vm12, %v4138_v15  ;;  %v3495_v52 = vmax.f32 %v3464_v51, 0.0  ;;  %v3466_v60 = vpop.f32.mrf.mxu0  ;;  %v4154_v45 = vrot.slane %v4146_v63, %v5156_v8  ;;  %4415 = vst [vmem:[%s6638_s11 + $0x28] sm:$0xff] (%p5128_p4), %v4414_v14  ;;  %v4428_v63 = vld [vmem:[%s6482_s18 + $0x50] sm:$0xff] (%p5128_p4)  ;;  %v4430_v42 = vld [vmem:[%s6482_s18 + $0x58] sm:$0xff] (%p5128_p4) }
 0x406   : > { %v4161_v13 = vrot.slane %v4147_v26, %v5156_v8  ;;  %v3806_v12 = vcombine.high %v3804_v59, %v3804_v59  ;;  %v4170_v20 = vcombine.low %v3805_v56, %v3804_v59  ;;  %4301 = vst.msk [vmem:[%s6482_s18 + $0xc8] sm:$0x3] %vm4276_vm11, %v4169_v46  ;;  %4421 = vst [vmem:[%s6638_s11 + $0x60] sm:$0xff] (%p5128_p4), %v4420_v24  ;;  %v4432_v35 = vld [vmem:[%s6482_s18 + $0x60] sm:$0xff] (%p5128_p4)  ;;  %v4434_v15 = vld [vmem:[%s6482_s18 + $0x68] sm:$0xff] (%p5128_p4) }
 0x407   : > { %v3807_v61 = vcombine.high %v3495_v52, %v3495_v52  ;;  %v3814_v16 = vrot.slane %v3495_v52, %v5156_v8  ;;  %v3469_v31 = vpop.f32.mrf.mxu0  ;;  %4423 = vst [vmem:[%s6638_s11 + $0x68] sm:$0xff] (%p5128_p4), %v4422_v47  ;;  %4425 = vst [vmem:[%s6638_s11 + $0x80] sm:$0xff] (%p5128_p4), %v4424_v9  ;;  %v4436_v51 = vld [vmem:[%s6482_s18 + $0x70] sm:$0xff] (%p5128_p4)  ;;  %v4438_v26 = vld [vmem:[%s6482_s18 + $0x78] sm:$0xff] (%p5128_p4) }
 0x408   : > { %v4162_v6 = vcombine.low %v4154_v45, %v4161_v13  ;;  %v3496_v44 = vmax.f32 %v3469_v31, 0.0  ;;  %v4178_v34 = vrot.slane %v4170_v20, %v5156_v8  ;;  %4427 = vst [vmem:[%s6638_s11 + $0x88] sm:$0xff] (%p5128_p4), %v4426_v58  ;;  %4429 = vst [vmem:[%s6638_s11 + $0xa0] sm:$0xff] (%p5128_p4), %v4428_v63  ;;  %v4440_v59 = vld [vmem:[%s6482_s18 + $0x80] sm:$0xff] (%p5128_p4)  ;;  %v4442_v56 = vld [vmem:[%s6482_s18 + $0x88] sm:$0xff] (%p5128_p4) }
 0x409   : > { %v3821_v1 = vrot.slane %v3807_v61, %v5156_v8  ;;  %v3822_v11 = vcombine.high %v3814_v16, %v3814_v16  ;;  %v4171_v49 = vcombine.low %v3806_v12, %v3814_v16  ;;  %v3471_v2 = vpop.f32.mrf.mxu0  ;;  %4431 = vst [vmem:[%s6638_s11 + $0xa8] sm:$0xff] (%p5128_p4), %v4430_v42  ;;  %4433 = vst [vmem:[%s6638_s11 + $0xc0] sm:$0xff] (%p5128_p4), %v4432_v35  ;;  %v4444_v46 = vld [vmem:[%s6482_s18 + $0x90] sm:$0xff] (%p5128_p4)  ;;  %v4446_v52 = vld [vmem:[%s6482_s18 + $0x98] sm:$0xff] (%p5128_p4) }
 0x40a   : > { %4300 = vst.msk [vmem:[%s6482_s18 + $0xc0] sm:$0xff] %vm4274_vm12, %v4162_v6  ;;  %v3824_v54 = vcombine.high %v3496_v44, %v3496_v44  ;;  %v3831_v25 = vrot.slane %v3496_v44, %v5156_v8  ;;  %4435 = vst [vmem:[%s6638_s11 + $0xc8] sm:$0xff] (%p5128_p4), %v4434_v15  ;;  %v4448_v60 = vld [vmem:[%s6482_s18 + $0xa0] sm:$0xff] (%p5128_p4)  ;;  %v4450_v45 = vld [vmem:[%s6482_s18 + $0xa8] sm:$0xff] (%p5128_p4) }
 0x40b   : > { %v3823_v29 = vcombine.high %v3821_v1, %v3821_v1  ;;  %v4185_v33 = vrot.slane %v4171_v49, %v5156_v8  ;;  %v4193_v19 = vrot.slane %v3822_v11, %v5156_v8  ;;  %v3474_v41 = vpop.f32.mrf.mxu0  ;;  %4437 = vst [vmem:[%s6638_s11 + $0xe0] sm:$0xff] (%p5128_p4), %v4436_v51  ;;  %4439 = vst [vmem:[%s6638_s11 + $0xe8] sm:$0xff] (%p5128_p4), %v4438_v26  ;;  %v4454_v12 = vld [vmem:[%s6482_s18 + $0xb8] sm:$0xff] (%p5128_p4) }
 0x40c   : > { %v3838_v38 = vrot.slane %v3824_v54, %v5156_v8  ;;  %v3839_v3 = vcombine.high %v3831_v25, %v3831_v25  ;;  %v3497_v10 = vmax.f32 %v3474_v41, 0.0  ;;  %4441 = vst [vmem:[%s6638_s11 + $0x100] sm:$0xff] (%p5128_p4), %v4440_v59  ;;  %4443 = vst [vmem:[%s6638_s11 + $0x108] sm:$0xff] (%p5128_p4), %v4442_v56  ;;  %v4452_v13 = vld [vmem:[%s6482_s18 + $0xb0] sm:$0xff] (%p5128_p4) }
 0x40d   : > { %v4186_v50 = vcombine.low %v4178_v34, %v4185_v33  ;;  %v4194_v28 = vcombine.low %v3821_v1, %v3823_v29  ;;  %4303 = vst.msk [vmem:[%s6482_s18 + $0xd8] sm:$0x3] %vm4276_vm11, %v4193_v19  ;;  %v3476_v0 = vpop.f32.mrf.mxu0  ;;  %4445 = vst [vmem:[%s6638_s11 + $0x120] sm:$0xff] (%p5128_p4), %v4444_v46  ;;  %v4458_v61 = vld [vmem:[%s6482_s18 + $0xc8] sm:$0xff] (%p5128_p4) }
 0x40e   : > { %v4195_v57 = vcombine.low %v3831_v25, %v3839_v3  ;;  %v4217_v17 = vrot.slane %v3838_v38, %v5156_v8  ;;  %v3840_v5 = vcombine.high %v3838_v38, %v3838_v38  ;;  %v3841_v37 = vcombine.high %v3497_v10, %v3497_v10  ;;  %4447 = vst [vmem:[%s6638_s11 + $0x128] sm:$0xff] (%p5128_p4), %v4446_v52 }
 0x40f   : > { %4302 = vst.msk [vmem:[%s6482_s18 + $0xd0] sm:$0xff] %vm4274_vm12, %v4186_v50  ;;  %v3848_v30 = vrot.slane %v3497_v10, %v5156_v8  ;;  %v4202_v55 = vrot.slane %v4194_v28, %v5156_v8  ;;  %4449 = vst [vmem:[%s6638_s11 + $0x140] sm:$0xff] (%p5128_p4), %v4448_v60 }
 0x410   : > { %v4209_v22 = vrot.slane %v4195_v57, %v5156_v8  ;;  %4305 = vst.msk [vmem:[%s6482_s18 + $0xe8] sm:$0x3] %vm4276_vm11, %v4217_v17  ;;  %v3855_v40 = vrot.slane %v3841_v37, %v5156_v8  ;;  %4451 = vst [vmem:[%s6638_s11 + $0x148] sm:$0xff] (%p5128_p4), %v4450_v45 }
 0x411   : > { %v3856_v53 = vcombine.high %v3848_v30, %v3848_v30  ;;  %v4218_v4 = vcombine.low %v3840_v5, %v3848_v30  ;;  %4453 = vst [vmem:[%s6638_s11 + $0x160] sm:$0xff] (%p5128_p4), %v4452_v13  ;;  %4455 = vst [vmem:[%s6638_s11 + $0x168] sm:$0xff] (%p5128_p4), %v4454_v12  ;;  %v4456_v20 = vld [vmem:[%s6482_s18 + $0xc0] sm:$0xff] (%p5128_p4) }
 0x412   : > { %v4210_v36 = vcombine.low %v4202_v55, %v4209_v22  ;;  %v3857_v23 = vcombine.high %v3855_v40, %v3855_v40  ;;  %4457 = vst [vmem:[%s6638_s11 + $0x180] sm:$0xff] (%p5128_p4), %v4456_v20  ;;  %4459 = vst [vmem:[%s6638_s11 + $0x188] sm:$0xff] (%p5128_p4), %v4458_v61 }
 0x413   : > { %v4219_v32 = vcombine.low %v3856_v53, %v3855_v40  ;;  %v4226_v18 = vrot.slane %v4218_v4, %v5156_v8 }
 0x414   : > { %4304 = vst.msk [vmem:[%s6482_s18 + $0xe0] sm:$0xff] %vm4274_vm12, %v4210_v36  ;;  %v4241_v43 = vrot.slane %v3857_v23, %v5156_v8  ;;  %v4462_v31 = vld [vmem:[%s6482_s18 + $0xd8] sm:$0xff] (%p5128_p4) }
 0x415   : > { %v4233_v27 = vrot.slane %v4219_v32, %v5156_v8  ;;  %4314 = sbr.rel (!%p5128_p4) target bundleno = 1058 (0x422), region = 44  ;;  %v4408_v8 = vld [vmem:[%s6482_s18] sm:$0xff] (%p5128_p4)  ;;  %4463 = vst [vmem:[%s6638_s11 + $0x1a8] sm:$0xff] (%p5128_p4), %v4462_v31 }
 0x416   : > { %4307 = vst.msk [vmem:[%s6482_s18 + $0xf8] sm:$0x3] %vm4276_vm11, %v4241_v43  ;;  %4409 = vst [vmem:[%s6638_s11] sm:$0xff] (%p5128_p4), %v4408_v8  ;;  %v4460_v16 = vld [vmem:[%s6482_s18 + $0xd0] sm:$0xff] (%p5128_p4) }
 0x417   : > { %v4234_v62 = vcombine.low %v4226_v18, %v4233_v27  ;;  %4461 = vst [vmem:[%s6638_s11 + $0x1a0] sm:$0xff] (%p5128_p4), %v4460_v16  ;;  %v4466_v44 = vld [vmem:[%s6482_s18 + $0xe8] sm:$0xff] (%p5128_p4) }
 0x418   : > { %4467 = vst [vmem:[%s6638_s11 + $0x1c8] sm:$0xff] (%p5128_p4), %v4466_v44 }
 0x419   : > { %4306 = vst.msk [vmem:[%s6482_s18 + $0xf0] sm:$0xff] %vm4274_vm12, %v4234_v62 }
 0x41b   : > { %v4464_v6 = vld [vmem:[%s6482_s18 + $0xe0] sm:$0xff] }
 0x41c   : > { %4465 = vst [vmem:[%s6638_s11 + $0x1c0] sm:$0xff] %v4464_v6 }
 0x41d   : > { %v4470_v11 = vld [vmem:[%s6482_s18 + $0xf8] sm:$0xff] }
 0x41e   : > { %4471 = vst [vmem:[%s6638_s11 + $0x1e8] sm:$0xff] %v4470_v11 }
 0x420   : > { %v4468_v1 = vld [vmem:[%s6482_s18 + $0xf0] sm:$0xff] }
 0x421   : > { %4469 = vst [vmem:[%s6638_s11 + $0x1e0] sm:$0xff] %v4468_v1 }
 0x422 PF: > { %p12_p8 = scmp.ge.s32.totalorder %s5118_s22, 4   ;;  %s6891_s18 = smov %s5063_s19 }
 0x423   : > { %s6892_s19 = smov %s5126_s25  ;;  %s6893_s20 = smov %s5118_s22 }
 0x424   :  { %14 = sbr.rel (!%p12_p8) target bundleno = 2 (0x2), region = 110 }

</bundles_post_ra>
